<compile_context>
chip_gen: v6e
topology: v6e:2x2x1
jax: 0.10.0
libtpu: 0.0.40
codegen_flags: <defaults>
</compile_context>

<pallas_src>
import functools

import jax
import jax.numpy as jnp
from jax.experimental import pallas as pl
from jax.experimental.pallas import tpu as pltpu


# ------------------------------ fused Pallas kernel ------------------------------

def _egcn_fused_kernel(a_ref, x_ref, w_ref, b_ref, p_ref, wl_ref, bl_ref,
                       o_ref, h_buf, xw_buf, acc_ref, pool_ref, *,
                       tm, tk, a_resident):
    l = pl.program_id(0)           # GCN layer (0..2), sequential
    i = pl.program_id(1)           # row tile of A_hat / output nodes
    k = pl.program_id(2)           # reduction (column) tile of A_hat
    n_i = pl.num_programs(1)
    n_k = pl.num_programs(2)

    row = pl.multiple_of(i * tm, tm)
    col = pl.multiple_of(k * tk, tk)
    # layer 0 writes slot 0, layer 1 reads slot 0 / writes slot 1, layer 2 reads slot 1.
    r_slot = jnp.maximum(l - 1, 0)
    w_slot = jnp.minimum(l, 1)

    # ---- one-time init: zero the pooled-feature accumulator ----
    @pl.when((l == 0) & (i == 0) & (k == 0))
    def _():
        pool_ref[...] = jnp.zeros_like(pool_ref)

    # ---- per layer: compute the (tk, d) slab of X@W exactly once (first row tile) ----
    @pl.when(i == 0)
    def _():
        @pl.when(l == 0)                 # layer-0 input is the streamed X tile (bf16)
        def _():
            xw_buf[pl.ds(col, tk), :] = jnp.dot(
                x_ref[...], w_ref[0],
                preferred_element_type=jnp.float32).astype(jnp.bfloat16)

        @pl.when(l > 0)                  # later layers read the bf16 ping-pong scratch
        def _():
            xw_buf[pl.ds(col, tk), :] = jnp.dot(
                h_buf[r_slot, pl.ds(col, tk), :], w_ref[0],
                preferred_element_type=jnp.float32).astype(jnp.bfloat16)

    # ---- accumulate A_hat[i, k] @ (XW)[k] into the f32 row-tile accumulator ----
    @pl.when(k == 0)
    def _():
        acc_ref[...] = jnp.zeros_like(acc_ref)

    if a_resident:
        a_tile = a_ref[pl.ds(row, tm), pl.ds(col, tk)]   # whole A_hat lives in VMEM
    else:
        a_tile = a_ref[...]                              # streamed (tm, tk) tile
    acc_ref[...] += jnp.dot(a_tile, xw_buf[pl.ds(col, tk), :],
                            preferred_element_type=jnp.float32)

    # ---- finalize this row tile: bias (+ReLU) fused; feed pooling on the last layer ----
    @pl.when(k == n_k - 1)
    def _():
        h_out = acc_ref[...] + b_ref[0]                  # (tm, d_pad) f32

        @pl.when(l < 2)                                  # hidden layers: ReLU, keep in VMEM
        def _():
            h_buf[w_slot, pl.ds(row, tm), :] = (
                jnp.maximum(h_out, 0.0).astype(jnp.bfloat16))

        @pl.when(l == 2)                                 # last layer -> global_mean_pool
        def _():
            pool_ref[...] += jnp.dot(p_ref[...], h_out.astype(jnp.bfloat16),
                                     preferred_element_type=jnp.float32)

    # ---- very last grid step: dropout(eval)=identity, then the Linear head ----
    @pl.when((l == 2) & (i == n_i - 1) & (k == n_k - 1))
    def _():
        logits = jnp.dot(pool_ref[...].astype(jnp.bfloat16), wl_ref[...],
                         preferred_element_type=jnp.float32) + bl_ref[...]
        o_ref[...] = logits.astype(o_ref.dtype)


# ------------------------------ glue (plain JAX) ------------------------------

def _round_up(x, m):
    return ((x + m - 1) // m) * m


def _pad2(a, rows, cols):
    return jnp.pad(a, ((0, rows - a.shape[0]), (0, cols - a.shape[1])))


def _vmem_budget_bytes():
    """Conservative scoped-VMEM budget (works on v5e/v6e 128 MiB and v7x 64 MiB)."""
    try:
        cap = pltpu.get_tpu_info().vmem_capacity_bytes
    except Exception:
        cap = 64 * 1024 * 1024
    return int(cap) * 3 // 4


def _pick_tile(n):
    """Largest MXU-friendly A tile (<=512) that doesn't blow up padding."""
    n128 = _round_up(max(n, 128), 128)
    tile = 128
    for cand in (256, 512):
        if cand <= n128 and (n128 % cand == 0 or n128 >= 4 * cand):
            tile = cand
    return tile


def build_normalized_adjacency(edge_index, num_nodes):
    """Dense D^{-1/2}(A+I)D^{-1/2} (gcn_norm with add_remaining_self_loops semantics)."""
    src, dst = edge_index[0], edge_index[1]
    adj = jnp.zeros((num_nodes, num_nodes), jnp.float32)
    adj = adj.at[dst, src].add(1.0)                  # scatter-add; duplicate edges accumulate
    idx = jnp.arange(num_nodes)
    diag = jnp.diagonal(adj)
    adj = adj.at[idx, idx].set(jnp.where(diag > 0, diag, 1.0))   # add self-loops only where missing
    deg = adj.sum(axis=1)
    dinv_sqrt = jnp.where(deg > 0, 1.0 / jnp.sqrt(deg), 0.0)
    return dinv_sqrt[:, None] * adj * dinv_sqrt[None, :]


def build_mean_pool_matrix(batch, num_graphs, num_nodes):
    """P[g, n] = 1/|graph g| if node n belongs to graph g, else 0."""
    onehot = (batch[None, :] == jnp.arange(num_graphs)[:, None]).astype(jnp.float32)
    counts = onehot.sum(axis=1, keepdims=True)
    return onehot / jnp.maximum(counts, 1.0)


def init_params(key, num_node_features, hidden_channels, num_classes):
    keys = jax.random.split(key, 8)

    def glorot(k, fan_in, fan_out):
        limit = jnp.sqrt(6.0 / (fan_in + fan_out))
        return jax.random.uniform(k, (fan_in, fan_out), jnp.float32, -limit, limit)

    return {
        "conv1_w": glorot(keys[0], num_node_features, hidden_channels),
        "conv1_b": jnp.zeros((hidden_channels,), jnp.float32),
        "conv2_w": glorot(keys[1], hidden_channels, hidden_channels),
        "conv2_b": jnp.zeros((hidden_channels,), jnp.float32),
        "conv3_w": glorot(keys[2], hidden_channels, hidden_channels),
        "conv3_b": jnp.zeros((hidden_channels,), jnp.float32),
        "lin_w": glorot(keys[3], hidden_channels, num_classes),
        "lin_b": jax.random.uniform(
            keys[4], (num_classes,), jnp.float32,
            -1.0 / jnp.sqrt(hidden_channels), 1.0 / jnp.sqrt(hidden_channels)),
    }


def egcn_forward(params, x, edge_index, batch, num_graphs, *, tile=None, a_resident=None):
    n, f = x.shape
    h = params["conv1_w"].shape[1]
    c = params["lin_w"].shape[1]

    d_pad = _round_up(max(f, h, 128), 128)       # lane-dense shared feature dim
    c_pad = _round_up(max(c, 128), 128)          # lane-dense logits
    g_pad = _round_up(max(num_graphs, 8), 8)     # sublane-aligned graph dim

    if tile is None:
        tile = _pick_tile(n)
    assert tile % 128 == 0
    tm = tk = tile
    n_pad = _round_up(_round_up(max(n, 128), 128), tm)

    budget = _vmem_budget_bytes()

    def vmem_bytes(resident):
        a_bytes = 2 * n_pad * n_pad * 2 if resident else 3 * tm * tk * 2
        return (a_bytes
                + 2 * n_pad * d_pad * 2      # h_buf ping-pong (bf16)
                + n_pad * d_pad * 2          # xw_buf (bf16)
                + tm * d_pad * 4             # acc (f32)
                + g_pad * d_pad * 4          # pool accumulator (f32)
                + 2 * tk * d_pad * 2         # streamed X tiles
                + 2 * d_pad * d_pad * 2      # per-layer weight
                + 2 * g_pad * tm * 2         # pooling-matrix tiles
                + d_pad * c_pad * 2          # linear weight
                + 2 * (d_pad + c_pad) * 4    # biases
                + g_pad * c_pad * 4)         # logits block

    if a_resident is None:
        a_resident = vmem_bytes(True) <= budget

    a_hat = build_normalized_adjacency(edge_index, n)
    p = build_mean_pool_matrix(batch, num_graphs, n)

    # bf16 MXU operands; biases / accumulators stay f32 inside the kernel.
    a_pad = _pad2(a_hat, n_pad, n_pad).astype(jnp.bfloat16)
    p_pad = _pad2(p, g_pad, n_pad).astype(jnp.bfloat16)
    x_pad = _pad2(x, n_pad, d_pad).astype(jnp.bfloat16)

    w_stack = jnp.stack([
        _pad2(params["conv1_w"], d_pad, d_pad),
        _pad2(params["conv2_w"], d_pad, d_pad),
        _pad2(params["conv3_w"], d_pad, d_pad)]).astype(jnp.bfloat16)
    b_stack = jnp.stack([
        jnp.pad(params["conv1_b"], (0, d_pad - h)),
        jnp.pad(params["conv2_b"], (0, d_pad - h)),
        jnp.pad(params["conv3_b"], (0, d_pad - h))]).reshape(3, 1, d_pad).astype(jnp.float32)
    wl_pad = _pad2(params["lin_w"], d_pad, c_pad).astype(jnp.bfloat16)
    bl_pad = jnp.pad(params["lin_b"], (0, c_pad - c)).reshape(1, c_pad).astype(jnp.float32)

    grid = (3, n_pad // tm, n_pad // tk)
    kernel = functools.partial(_egcn_fused_kernel, tm=tm, tk=tk, a_resident=a_resident)

    if a_resident:
        # Whole bf16 A_hat stays in VMEM (constant block index -> single DMA, no restream).
        a_spec = pl.BlockSpec((n_pad, n_pad), lambda l, i, k: (0, 0))
    else:
        # HBM-streamed (tm, tk) tiles with a 3-deep pipeline to hide DMA issue latency.
        a_spec = pl.BlockSpec((tm, tk), lambda l, i, k: (i, k),
                              pipeline_mode=pl.Buffered(3))

    out = pl.pallas_call(
        kernel,
        out_shape=jax.ShapeDtypeStruct((g_pad, c_pad), jnp.float32),
        grid_spec=pltpu.PrefetchScalarGridSpec(
            num_scalar_prefetch=0,
            grid=grid,
            in_specs=[
                a_spec,                                                        # A_hat
                # X: only fetched while layer 0's first row-tile consumes it.
                pl.BlockSpec((tk, d_pad),
                             lambda l, i, k: (jnp.where((l == 0) & (i == 0), k, 0), 0)),
                pl.BlockSpec((1, d_pad, d_pad), lambda l, i, k: (l, 0, 0)),    # per-layer weight
                pl.BlockSpec((1, 1, d_pad), lambda l, i, k: (l, 0, 0)),        # per-layer bias
                # pooling matrix: only follows i during the last layer.
                pl.BlockSpec((g_pad, tm),
                             lambda l, i, k: (0, jnp.where(l == 2, i, 0))),
                pl.BlockSpec((d_pad, c_pad), lambda l, i, k: (0, 0)),          # linear weight
                pl.BlockSpec((1, c_pad), lambda l, i, k: (0, 0)),              # linear bias
            ],
            out_specs=pl.BlockSpec((g_pad, c_pad), lambda l, i, k: (0, 0)),    # logits
            scratch_shapes=[
                pltpu.VMEM((2, n_pad, d_pad), jnp.bfloat16),   # ping-pong activations (bf16)
                pltpu.VMEM((n_pad, d_pad), jnp.bfloat16),      # XW of the current layer
                pltpu.VMEM((tm, d_pad), jnp.float32),          # A@XW row-tile accumulator
                pltpu.VMEM((g_pad, d_pad), jnp.float32),       # pooled-feature accumulator
            ],
        ),
        compiler_params=pltpu.CompilerParams(
            # layer axis is sequential; i carries xw_buf / pool_ref state; k is a reduction.
            dimension_semantics=("arbitrary", "arbitrary", "arbitrary"),
            vmem_limit_bytes=budget),
    )(a_pad, x_pad, w_stack, b_stack, p_pad, wl_pad, bl_pad)

    return out[:num_graphs, :c]


def egcn_reference(params, x, edge_index, batch, num_graphs):
    """Pure-JAX reference mirroring the kernel's bf16-operand / f32-accumulate policy."""
    bf16 = jnp.bfloat16
    a = build_normalized_adjacency(edge_index, x.shape[0]).astype(bf16)
    p = build_mean_pool_matrix(batch, num_graphs, x.shape[0]).astype(bf16)
    h = x.astype(jnp.float32)
    for idx, (wk, bk) in enumerate(
            [("conv1_w", "conv1_b"), ("conv2_w", "conv2_b"), ("conv3_w", "conv3_b")]):
        xw = jnp.dot(h.astype(bf16), params[wk].astype(bf16),
                     preferred_element_type=jnp.float32).astype(bf16)
        h = jnp.dot(a, xw, preferred_element_type=jnp.float32) + params[bk]
        if idx < 2:
            h = jnp.maximum(h, 0.0)
    pooled = jnp.dot(p, h.astype(bf16), preferred_element_type=jnp.float32)
    return jnp.dot(pooled.astype(bf16), params["lin_w"].astype(bf16),
                   preferred_element_type=jnp.float32) + params["lin_b"]


# ----------------------------------- main -----------------------------------

if __name__ == "__main__":
    key = jax.random.PRNGKey(0)
    k_param, k_x, k_e = jax.random.split(key, 3)

    num_nodes = 200            # pads to 256
    num_node_features = 8
    hidden_channels = 32
    num_classes = 4
    num_graphs = 2
    num_edges = 800

    x = jax.random.normal(k_x, (num_nodes, num_node_features), jnp.float32)
    edge_index = jax.random.randint(k_e, (2, num_edges), 0, num_nodes, jnp.int32)
    batch = jnp.concatenate(
        [jnp.zeros((num_nodes // 2,), jnp.int32),
         jnp.ones((num_nodes - num_nodes // 2,), jnp.int32)])

    params = init_params(k_param, num_node_features, hidden_channels, num_classes)
    ref = egcn_reference(params, x, edge_index, batch, num_graphs)

    # Path 1: auto config -> 256x256 A tile, VMEM-resident A_hat, grid (3, 1, 1).
    out = jax.block_until_ready(egcn_forward(params, x, edge_index, batch, num_graphs))
    assert out.shape == (num_graphs, num_classes)
    assert jnp.all(jnp.isfinite(out))
    assert jnp.allclose(out, ref, rtol=1e-2, atol=1e-2), (out, ref)

    # Path 2: forced HBM-streamed A_hat with (128,128) tiles -> grid (3, 2, 2); exercises the
    # multi-tile accumulation / bf16 ping-pong / Buffered streaming path used at large N.
    out_s = jax.block_until_ready(
        egcn_forward(params, x, edge_index, batch, num_graphs, tile=128, a_resident=False))
    assert jnp.allclose(out_s, ref, rtol=1e-2, atol=1e-2), (out_s, ref)

    print("KERNEL_OK")
</pallas_src>

<mosaic_0001>
module attributes {stable_mosaic.version = 11 : i64} {
  func.func @_egcn_fused_kernel(%arg0: i32, %arg1: i32, %arg2: i32, %arg3: memref<256x256xbf16, #tpu.memory_space<vmem>>, %arg4: memref<256x128xbf16, #tpu.memory_space<vmem>>, %arg5: memref<1x128x128xbf16, #tpu.memory_space<vmem>>, %arg6: memref<1x1x128xf32, #tpu.memory_space<vmem>>, %arg7: memref<8x256xbf16, #tpu.memory_space<vmem>>, %arg8: memref<128x128xbf16, #tpu.memory_space<vmem>>, %arg9: memref<1x128xf32, #tpu.memory_space<vmem>>, %arg10: memref<8x128xf32, #tpu.memory_space<vmem>>, %arg11: memref<2x256x128xbf16, #tpu.memory_space<vmem>>, %arg12: memref<256x128xbf16, #tpu.memory_space<vmem>>, %arg13: memref<256x128xf32, #tpu.memory_space<vmem>>, %arg14: memref<8x128xf32, #tpu.memory_space<vmem>>) attributes {dimension_semantics = [#tpu.dimension_semantics<arbitrary>, #tpu.dimension_semantics<arbitrary>, #tpu.dimension_semantics<arbitrary>], iteration_bounds = array<i64: 3, 1, 1>, scalar_prefetch = 0 : i64, scratch_operands = 4 : i64, tpu.core_type = #tpu.core_type<tc>, window_params = [{pipeline_mode = #tpu.pipeline_mode<synchronous>, transform_indices = @transform_0, window_bounds = array<i64: 256, 256>}, {transform_indices = @transform_1, window_bounds = array<i64: 256, 128>}, {transform_indices = @transform_2, window_bounds = array<i64: 1, 128, 128>}, {transform_indices = @transform_3, window_bounds = array<i64: 1, 1, 128>}, {transform_indices = @transform_4, window_bounds = array<i64: 8, 256>}, {pipeline_mode = #tpu.pipeline_mode<synchronous>, transform_indices = @transform_5, window_bounds = array<i64: 128, 128>}, {pipeline_mode = #tpu.pipeline_mode<synchronous>, transform_indices = @transform_6, window_bounds = array<i64: 1, 128>}, {pipeline_mode = #tpu.pipeline_mode<synchronous>, transform_indices = @transform_7, window_bounds = array<i64: 8, 128>}]} {
    %c256_i32 = arith.constant 256 : i32
    %0 = arith.muli %arg1, %c256_i32 : i32
    %1 = tpu.assume_multiple %0, 256 : i32
    %c256_i32_0 = arith.constant 256 : i32
    %2 = arith.muli %arg2, %c256_i32_0 : i32
    %3 = tpu.assume_multiple %2, 256 : i32
    %c1_i32 = arith.constant 1 : i32
    %4 = arith.subi %arg0, %c1_i32 : i32
    %c0_i32 = arith.constant 0 : i32
    %5 = arith.maxsi %4, %c0_i32 : i32
    %c1_i32_1 = arith.constant 1 : i32
    %6 = arith.minsi %arg0, %c1_i32_1 : i32
    %c0_i32_2 = arith.constant 0 : i32
    %7 = arith.cmpi eq, %arg0, %c0_i32_2 : i32
    %c0_i32_3 = arith.constant 0 : i32
    %8 = arith.cmpi eq, %arg1, %c0_i32_3 : i32
    %9 = arith.andi %7, %8 : i1
    %c0_i32_4 = arith.constant 0 : i32
    %10 = arith.cmpi eq, %arg2, %c0_i32_4 : i32
    %11 = arith.andi %9, %10 : i1
    %12 = arith.extui %11 : i1 to i32
    %c0_i32_5 = arith.constant 0 : i32
    %13 = arith.cmpi ne, %12, %c0_i32_5 : i32
    scf.if %13 {
      %cst_19 = arith.constant 0.000000e+00 : f32
      %39 = vector.broadcast %cst_19 : f32 to vector<8x128xf32>
      %c0_20 = arith.constant 0 : index
      %c0_21 = arith.constant 0 : index
      %40 = vector.load %arg14[%c0_20, %c0_21] : memref<8x128xf32, #tpu.memory_space<vmem>>, vector<8x128xf32>
      tpu.vector_store %arg14[%c0_20, %c0_21], %39 {strides = array<i32>} : memref<8x128xf32, #tpu.memory_space<vmem>>, vector<8x128xf32>,
    } else {
    }
    %c0_i32_6 = arith.constant 0 : i32
    %14 = arith.cmpi eq, %arg1, %c0_i32_6 : i32
    %15 = arith.extui %14 : i1 to i32
    %c0_i32_7 = arith.constant 0 : i32
    %16 = arith.cmpi ne, %15, %c0_i32_7 : i32
    scf.if %16 {
      %c0_i32_19 = arith.constant 0 : i32
      %39 = arith.cmpi eq, %arg0, %c0_i32_19 : i32
      %40 = arith.extui %39 : i1 to i32
      %c0_i32_20 = arith.constant 0 : i32
      %41 = arith.cmpi ne, %40, %c0_i32_20 : i32
      scf.if %41 {
        %c0_23 = arith.constant 0 : index
        %c0_24 = arith.constant 0 : index
        %45 = vector.load %arg4[%c0_23, %c0_24] : memref<256x128xbf16, #tpu.memory_space<vmem>>, vector<256x128xbf16>
        %c0_25 = arith.constant 0 : index
        %c0_26 = arith.constant 0 : index
        %c0_27 = arith.constant 0 : index
        %46 = vector.load %arg5[%c0_25, %c0_26, %c0_27] : memref<1x128x128xbf16, #tpu.memory_space<vmem>>, vector<1x128x128xbf16>
        %47 = vector.shape_cast %46 : vector<1x128x128xbf16> to vector<128x128xbf16>
        %cst_28 = arith.constant dense<0.000000e+00> : vector<256x128xf32>
        %48 = tpu.matmul %45, %47, %cst_28 {dimension_numbers = #tpu.dot_dimension_numbers<[1], [0], [0], [1], [0, 0, 1, 1], [], []>} : vector<256x128xbf16>, vector<128x128xbf16>, vector<256x128xf32> -> vector<256x128xf32>
        %49 = arith.truncf %48 : vector<256x128xf32> to vector<256x128xbf16>
        %50 = arith.index_cast %3 : i32 to index
        %c0_29 = arith.constant 0 : index
        %51 = vector.load %arg12[%50, %c0_29] : memref<256x128xbf16, #tpu.memory_space<vmem>>, vector<256x128xbf16>
        tpu.vector_store %arg12[%50, %c0_29], %49 {strides = array<i32>} : memref<256x128xbf16, #tpu.memory_space<vmem>>, vector<256x128xbf16>,
      } else {
      }
      %c0_i32_21 = arith.constant 0 : i32
      %42 = arith.cmpi sgt, %arg0, %c0_i32_21 : i32
      %43 = arith.extui %42 : i1 to i32
      %c0_i32_22 = arith.constant 0 : i32
      %44 = arith.cmpi ne, %43, %c0_i32_22 : i32
      scf.if %44 {
        %45 = arith.index_cast %5 : i32 to index
        %46 = arith.index_cast %3 : i32 to index
        %c0_23 = arith.constant 0 : index
        %47 = vector.load %arg11[%45, %46, %c0_23] : memref<2x256x128xbf16, #tpu.memory_space<vmem>>, vector<1x256x128xbf16>
        %48 = vector.shape_cast %47 : vector<1x256x128xbf16> to vector<256x128xbf16>
        %c0_24 = arith.constant 0 : index
        %c0_25 = arith.constant 0 : index
        %c0_26 = arith.constant 0 : index
        %49 = vector.load %arg5[%c0_24, %c0_25, %c0_26] : memref<1x128x128xbf16, #tpu.memory_space<vmem>>, vector<1x128x128xbf16>
        %50 = vector.shape_cast %49 : vector<1x128x128xbf16> to vector<128x128xbf16>
        %cst_27 = arith.constant dense<0.000000e+00> : vector<256x128xf32>
        %51 = tpu.matmul %48, %50, %cst_27 {dimension_numbers = #tpu.dot_dimension_numbers<[1], [0], [0], [1], [0, 0, 1, 1], [], []>} : vector<256x128xbf16>, vector<128x128xbf16>, vector<256x128xf32> -> vector<256x128xf32>
        %52 = arith.truncf %51 : vector<256x128xf32> to vector<256x128xbf16>
        %53 = arith.index_cast %3 : i32 to index
        %c0_28 = arith.constant 0 : index
        %54 = vector.load %arg12[%53, %c0_28] : memref<256x128xbf16, #tpu.memory_space<vmem>>, vector<256x128xbf16>
        tpu.vector_store %arg12[%53, %c0_28], %52 {strides = array<i32>} : memref<256x128xbf16, #tpu.memory_space<vmem>>, vector<256x128xbf16>,
      } else {
      }
    } else {
    }
    %c0_i32_8 = arith.constant 0 : i32
    %17 = arith.cmpi eq, %arg2, %c0_i32_8 : i32
    %18 = arith.extui %17 : i1 to i32
    %c0_i32_9 = arith.constant 0 : i32
    %19 = arith.cmpi ne, %18, %c0_i32_9 : i32
    scf.if %19 {
      %cst_19 = arith.constant 0.000000e+00 : f32
      %39 = vector.broadcast %cst_19 : f32 to vector<256x128xf32>
      %c0_20 = arith.constant 0 : index
      %c0_21 = arith.constant 0 : index
      %40 = vector.load %arg13[%c0_20, %c0_21] : memref<256x128xf32, #tpu.memory_space<vmem>>, vector<256x128xf32>
      tpu.vector_store %arg13[%c0_20, %c0_21], %39 {strides = array<i32>} : memref<256x128xf32, #tpu.memory_space<vmem>>, vector<256x128xf32>,
    } else {
    }
    %20 = arith.index_cast %1 : i32 to index
    %21 = arith.index_cast %3 : i32 to index
    %22 = vector.load %arg3[%20, %21] : memref<256x256xbf16, #tpu.memory_space<vmem>>, vector<256x256xbf16>
    %c0 = arith.constant 0 : index
    %c0_10 = arith.constant 0 : index
    %23 = vector.load %arg13[%c0, %c0_10] : memref<256x128xf32, #tpu.memory_space<vmem>>, vector<256x128xf32>
    %24 = arith.index_cast %3 : i32 to index
    %c0_11 = arith.constant 0 : index
    %25 = vector.load %arg12[%24, %c0_11] : memref<256x128xbf16, #tpu.memory_space<vmem>>, vector<256x128xbf16>
    %cst = arith.constant dense<0.000000e+00> : vector<256x128xf32>
    %26 = tpu.matmul %22, %25, %cst {dimension_numbers = #tpu.dot_dimension_numbers<[1], [0], [0], [1], [0, 0, 1, 1], [], []>} : vector<256x256xbf16>, vector<256x128xbf16>, vector<256x128xf32> -> vector<256x128xf32>
    %27 = arith.addf %23, %26 : vector<256x128xf32>
    %c0_12 = arith.constant 0 : index
    %c0_13 = arith.constant 0 : index
    %28 = vector.load %arg13[%c0_12, %c0_13] : memref<256x128xf32, #tpu.memory_space<vmem>>, vector<256x128xf32>
    tpu.vector_store %arg13[%c0_12, %c0_13], %27 {strides = array<i32>} : memref<256x128xf32, #tpu.memory_space<vmem>>, vector<256x128xf32>,
    %c0_i32_14 = arith.constant 0 : i32
    %29 = arith.cmpi eq, %arg2, %c0_i32_14 : i32
    %30 = arith.extui %29 : i1 to i32
    %c0_i32_15 = arith.constant 0 : i32
    %31 = arith.cmpi ne, %30, %c0_i32_15 : i32
    scf.if %31 {
      %c0_19 = arith.constant 0 : index
      %c0_20 = arith.constant 0 : index
      %39 = vector.load %arg13[%c0_19, %c0_20] : memref<256x128xf32, #tpu.memory_space<vmem>>, vector<256x128xf32>
      %c0_21 = arith.constant 0 : index
      %c0_22 = arith.constant 0 : index
      %c0_23 = arith.constant 0 : index
      %40 = vector.load %arg6[%c0_21, %c0_22, %c0_23] : memref<1x1x128xf32, #tpu.memory_space<vmem>>, vector<1x1x128xf32>
      %41 = vector.shape_cast %40 : vector<1x1x128xf32> to vector<1x128xf32>
      %42 = vector.broadcast %41 : vector<1x128xf32> to vector<256x128xf32>
      %43 = arith.addf %39, %42 : vector<256x128xf32>
      %c2_i32_24 = arith.constant 2 : i32
      %44 = arith.cmpi slt, %arg0, %c2_i32_24 : i32
      %45 = arith.extui %44 : i1 to i32
      %c0_i32_25 = arith.constant 0 : i32
      %46 = arith.cmpi ne, %45, %c0_i32_25 : i32
      scf.if %46 {
        %cst_28 = arith.constant 0.000000e+00 : f32
        %50 = vector.broadcast %cst_28 : f32 to vector<256x128xf32>
        %51 = arith.maximumf %43, %50 : vector<256x128xf32>
        %52 = arith.truncf %51 : vector<256x128xf32> to vector<256x128xbf16>
        %53 = arith.index_cast %6 : i32 to index
        %54 = arith.index_cast %1 : i32 to index
        %c0_29 = arith.constant 0 : index
        %55 = vector.load %arg11[%53, %54, %c0_29] : memref<2x256x128xbf16, #tpu.memory_space<vmem>>, vector<1x256x128xbf16>
        %56 = vector.shape_cast %55 : vector<1x256x128xbf16> to vector<256x128xbf16>
        %57 = vector.shape_cast %52 : vector<256x128xbf16> to vector<1x256x128xbf16>
        tpu.vector_store %arg11[%53, %54, %c0_29], %57 {strides = array<i32>} : memref<2x256x128xbf16, #tpu.memory_space<vmem>>, vector<1x256x128xbf16>,
      } else {
      }
      %c2_i32_26 = arith.constant 2 : i32
      %47 = arith.cmpi eq, %arg0, %c2_i32_26 : i32
      %48 = arith.extui %47 : i1 to i32
      %c0_i32_27 = arith.constant 0 : i32
      %49 = arith.cmpi ne, %48, %c0_i32_27 : i32
      scf.if %49 {
        %c0_28 = arith.constant 0 : index
        %c0_29 = arith.constant 0 : index
        %50 = vector.load %arg14[%c0_28, %c0_29] : memref<8x128xf32, #tpu.memory_space<vmem>>, vector<8x128xf32>
        %c0_30 = arith.constant 0 : index
        %c0_31 = arith.constant 0 : index
        %51 = vector.load %arg7[%c0_30, %c0_31] : memref<8x256xbf16, #tpu.memory_space<vmem>>, vector<8x256xbf16>
        %52 = arith.truncf %43 : vector<256x128xf32> to vector<256x128xbf16>
        %cst_32 = arith.constant dense<0.000000e+00> : vector<8x128xf32>
        %53 = tpu.matmul %51, %52, %cst_32 {dimension_numbers = #tpu.dot_dimension_numbers<[1], [0], [0], [1], [0, 0, 1, 1], [], []>} : vector<8x256xbf16>, vector<256x128xbf16>, vector<8x128xf32> -> vector<8x128xf32>
        %54 = arith.addf %50, %53 : vector<8x128xf32>
        %c0_33 = arith.constant 0 : index
        %c0_34 = arith.constant 0 : index
        %55 = vector.load %arg14[%c0_33, %c0_34] : memref<8x128xf32, #tpu.memory_space<vmem>>, vector<8x128xf32>
        tpu.vector_store %arg14[%c0_33, %c0_34], %54 {strides = array<i32>} : memref<8x128xf32, #tpu.memory_space<vmem>>, vector<8x128xf32>,
      } else {
      }
    } else {
    }
    %c2_i32 = arith.constant 2 : i32
    %32 = arith.cmpi eq, %arg0, %c2_i32 : i32
    %c0_i32_16 = arith.constant 0 : i32
    %33 = arith.cmpi eq, %arg1, %c0_i32_16 : i32
    %34 = arith.andi %32, %33 : i1
    %c0_i32_17 = arith.constant 0 : i32
    %35 = arith.cmpi eq, %arg2, %c0_i32_17 : i32
    %36 = arith.andi %34, %35 : i1
    %37 = arith.extui %36 : i1 to i32
    %c0_i32_18 = arith.constant 0 : i32
    %38 = arith.cmpi ne, %37, %c0_i32_18 : i32
    scf.if %38 {
      %c0_19 = arith.constant 0 : index
      %c0_20 = arith.constant 0 : index
      %39 = vector.load %arg14[%c0_19, %c0_20] : memref<8x128xf32, #tpu.memory_space<vmem>>, vector<8x128xf32>
      %40 = arith.truncf %39 : vector<8x128xf32> to vector<8x128xbf16>
      %c0_21 = arith.constant 0 : index
      %c0_22 = arith.constant 0 : index
      %41 = vector.load %arg8[%c0_21, %c0_22] : memref<128x128xbf16, #tpu.memory_space<vmem>>, vector<128x128xbf16>
      %cst_23 = arith.constant dense<0.000000e+00> : vector<8x128xf32>
      %42 = tpu.matmul %40, %41, %cst_23 {dimension_numbers = #tpu.dot_dimension_numbers<[1], [0], [0], [1], [0, 0, 1, 1], [], []>} : vector<8x128xbf16>, vector<128x128xbf16>, vector<8x128xf32> -> vector<8x128xf32>
      %c0_24 = arith.constant 0 : index
      %c0_25 = arith.constant 0 : index
      %43 = vector.load %arg9[%c0_24, %c0_25] : memref<1x128xf32, #tpu.memory_space<vmem>>, vector<1x128xf32>
      %44 = vector.broadcast %43 : vector<1x128xf32> to vector<8x128xf32>
      %45 = arith.addf %42, %44 : vector<8x128xf32>
      %c0_26 = arith.constant 0 : index
      %c0_27 = arith.constant 0 : index
      %46 = vector.load %arg10[%c0_26, %c0_27] : memref<8x128xf32, #tpu.memory_space<vmem>>, vector<8x128xf32>
      tpu.vector_store %arg10[%c0_26, %c0_27], %45 {strides = array<i32>} : memref<8x128xf32, #tpu.memory_space<vmem>>, vector<8x128xf32>,
    } else {
    }
    return
  }
  func.func @transform_0(%arg0: i32, %arg1: i32, %arg2: i32) -> (i32, i32) {
    %c0_i32 = arith.constant 0 : i32
    %c0_i32_0 = arith.constant 0 : i32
    %c0_i32_1 = arith.constant 0 : i32
    return %c0_i32, %c0_i32_0 : i32, i32
  }
  func.func @transform_1(%arg0: i32, %arg1: i32, %arg2: i32) -> (i32, i32) {
    %c0_i32 = arith.constant 0 : i32
    %0 = arith.cmpi eq, %arg0, %c0_i32 : i32
    %c0_i32_0 = arith.constant 0 : i32
    %1 = arith.cmpi eq, %arg1, %c0_i32_0 : i32
    %2 = arith.andi %0, %1 : i1
    %c0_i32_1 = arith.constant 0 : i32
    %3 = arith.select %2, %arg2, %c0_i32_1 : i32
    %c0_i32_2 = arith.constant 0 : i32
    %c0_i32_3 = arith.constant 0 : i32
    return %3, %c0_i32_2 : i32, i32
  }
  func.func @transform_2(%arg0: i32, %arg1: i32, %arg2: i32) -> (i32, i32, i32) {
    %c0_i32 = arith.constant 0 : i32
    %c0_i32_0 = arith.constant 0 : i32
    %c0_i32_1 = arith.constant 0 : i32
    return %arg0, %c0_i32, %c0_i32_0 : i32, i32, i32
  }
  func.func @transform_3(%arg0: i32, %arg1: i32, %arg2: i32) -> (i32, i32, i32) {
    %c0_i32 = arith.constant 0 : i32
    %c0_i32_0 = arith.constant 0 : i32
    %c0_i32_1 = arith.constant 0 : i32
    return %arg0, %c0_i32, %c0_i32_0 : i32, i32, i32
  }
  func.func @transform_4(%arg0: i32, %arg1: i32, %arg2: i32) -> (i32, i32) {
    %c2_i32 = arith.constant 2 : i32
    %0 = arith.cmpi eq, %arg0, %c2_i32 : i32
    %c0_i32 = arith.constant 0 : i32
    %1 = arith.select %0, %arg1, %c0_i32 : i32
    %c0_i32_0 = arith.constant 0 : i32
    %c0_i32_1 = arith.constant 0 : i32
    return %c0_i32_0, %1 : i32, i32
  }
  func.func @transform_5(%arg0: i32, %arg1: i32, %arg2: i32) -> (i32, i32) {
    %c0_i32 = arith.constant 0 : i32
    %c0_i32_0 = arith.constant 0 : i32
    %c0_i32_1 = arith.constant 0 : i32
    return %c0_i32, %c0_i32_0 : i32, i32
  }
  func.func @transform_6(%arg0: i32, %arg1: i32, %arg2: i32) -> (i32, i32) {
    %c0_i32 = arith.constant 0 : i32
    %c0_i32_0 = arith.constant 0 : i32
    %c0_i32_1 = arith.constant 0 : i32
    return %c0_i32, %c0_i32_0 : i32, i32
  }
  func.func @transform_7(%arg0: i32, %arg1: i32, %arg2: i32) -> (i32, i32) {
    %c0_i32 = arith.constant 0 : i32
    %c0_i32_0 = arith.constant 0 : i32
    %c0_i32_1 = arith.constant 0 : i32
    return %c0_i32, %c0_i32_0 : i32, i32
  }
}

</mosaic_0001>

<bundles_post_ra>
// kernel: tpu_custom_call.1
= control target key start
LH: loop header
LB: loop body
LE: loop exit
PB: predicated region body
PF: predicated region fallthrough
CT: control target
= control target key end

     0   :  { %s4724_s0 = inlined_call_operand.hbm [shape: bf16[256,256], index: 0, kind: input, shape index: {}]   ;;  %s4725_s1 = inlined_call_operand.hbm [shape: bf16[256,128], index: 1, kind: input, shape index: {}]   ;;  %s4726_s2 = inlined_call_operand.hbm [shape: bf16[3,128,128], index: 2, kind: input, shape index: {}]   ;;  %s4727_s3 = inlined_call_operand.vmem [shape: f32[3,1,128], index: 3, kind: input, shape index: {}]   ;;  %s4728_s4 = inlined_call_operand.hbm [shape: bf16[8,256], index: 4, kind: input, shape index: {}]   ;;  %s4729_s5 = inlined_call_operand.hbm [shape: bf16[128,128], index: 5, kind: input, shape index: {}]   ;;  %s4730_s6 = inlined_call_operand.vmem [shape: f32[1,128], index: 6, kind: input, shape index: {}]   ;;  %s4731_s7 = inlined_call_operand.hbm [shape: f32[8,128], index: 7, kind: output, shape index: {}]  }
   0x1   :  { %4737 = sst [smem:[#allocation22_spill]] %s4725_s1 }
   0x2   :  { %4738 = sst [smem:[#allocation23_spill]] %s4729_s5 }
   0x3   :  { %4739 = sst [smem:[#allocation24_spill]] %s4730_s6 }
   0x4   :  { %4740 = sst [smem:[#allocation25_spill]] %s4731_s7 }
   0x5   :  { %12 = vsyncpa [#allocation7], 0 }
   0x6   :  { %13 = vsyncpa [#allocation10], 0 }
   0x7   :  { %15 = vsyncpa [#allocation10 + $0x1], 0 }
   0x8   :  { %16 = vsyncpa [#allocation13], 0 }
   0x9   :  { %18 = vsyncpa [#allocation13 + $0x1], 0 }
   0xa   :  { %19 = vsyncpa [#allocation8], 0  ;;  %s4267_s24 = smov 0   ;;  %s4269_s25 = smov 0  }
   0xb   :  { %s4271_s26 = smov 0   ;;  %s4273_s27 = smov 0  }
   0xc   :  { %s4275_s28 = smov 0   ;;  %s4277_s29 = smov 0  }
   0xd LB: > { %s4296_s30 = sadd.s32 4294967295, %s4212_s29   ;;  %p121_p1 = scmp.ne.s32.totalorder %s4196_s25, %s4192_s24  ;;  %s4212_s29 = sphi %s4277_s29, %s25_s29   ;;  %s4208_s28 = sphi %s4275_s28, %s4768_s28   ;;  %s4204_s27 = sphi %s4273_s27, %s4767_s27   ;;  %s4200_s26 = sphi %s4271_s26, %s4766_s26   ;;  %s4196_s25 = sphi %s4269_s25, %s4765_s25   ;;  %s4192_s24 = sphi %s4267_s24, %s4764_s24  }
   0xe   : > { %p4732_p2 = scmp.eq.s32.totalorder %s4296_s30, 0  ;;  %p2771_p3 = scmp.ge.s32.totalorder %s4212_s29, 1 }
   0xf   : > { %p251_p4 = scmp.lt.s32.totalorder %s4212_s29, 4  ;;  %s4214_s10 = smov [#allocation14]  }
  0x10   : > { %p4306_p5 = por %p4732_p2, %p121_p1  ;;  %s276_s11 = sshll.u32 %s4214_s10, 4  ;;  %s277_s11 = int_to_ptr.vmem [resolvable:$true] %s276_s11 }
  0x11   : > { %p4310_p6 = pnand %p2771_p3, %p251_p4  ;;  %p116_p9 = scmp.eq.s32.totalorder %s4212_s29, 0 }
  0x12   : > { %p3795_p10 = scmp.lt.s32.totalorder %s4212_s29, 3  ;;  %s4734_s13 = sand.u32 1, %s4212_s29  }
  0x13   : > { %p3776_p7 = pneg %p4310_p6  ;;  %s3997_s14 = scalar_lea.vmem %s277_s11, 1024 }
  0x14   : > { %p3998_p12 = scmp.ne.s32.totalorder %s277_s11, %s3997_s14  ;;  %p4005_p3 = scmp.lt.s32.totalorder %s277_s11, %s277_s11 }
  0x15   : > { %p4318_p8 = pnand %p3776_p7, %p4732_p2  ;;  %p4006_p4 = scmp.lt.s32.totalorder %s3997_s14, %s3997_s14 }
  0x17   : > { %p4733_p11 = pneg %p4318_p8  ;;  %p4007_p0 = por %p4006_p4, %p4005_p3 }
  0x19   : > { %p4000_p13 = pnand %p3998_p12, %p4733_p11 }
  0x1b   : > { %p4001_p1 = pneg %p4000_p13 }
  0x1d   : > { %p4008_p7 = pnand %p4007_p0, %p4001_p1 }
  0x1f   : > { %4011 = shalt.err (!%p4008_p7)
}
  0x20   : > { %s4735_s15 = smov 64   ;;  %s4736_s16 = smov 4  }
  0x21   : > { %s4744_s5 = sld [smem:[#allocation23_spill]]  ;;  %p4745_p0 = scmp.ne.s32.totalorder %s4200_s26, %s4196_s25 }
  0x22   : > { %p4347_p13 = pnand %p3795_p10, %p116_p9  ;;  %s4217_s20 = smov [#allocation9]  }
  0x23   : > { %p117_p12 = por %p116_p9, %p4745_p0  ;;  %s309_s21 = sshll.u32 %s4217_s20, 4  ;;  %s310_s21 = int_to_ptr.vmem [resolvable:$true] %s309_s21 }
  0x24   : > { %s4359_s23 = scalar_lea.sflag [#allocation10], %s4734_s13  ;;  %p4014_p3 = pneg %p4347_p13 }
  0x25   : > { %p4353_p1 = pnand %p3795_p10, %p117_p12  ;;  %s4023_s24 = scalar_lea.vmem %s310_s21, 2048 }
  0x26   : > { %p4024_p9 = scmp.ne.s32.totalorder %s310_s21, %s4023_s24  ;;  %s4030_s10 = scalar_lea.vmem %s310_s21, 4096 }
  0x27   : > { %3782 = dma.hbm_to_vmem [thread:$0]  (!%p4318_p8), %s4744_s5, 1024, %s277_s11, [#allocation13], %s4735_s15, %s4735_s15, %s4736_s16  }
  0x28   : > { %p4026_p4 = pnand %p4024_p9, %p4014_p3  ;;  %p4031_p0 = scmp.lt.s32.totalorder %s310_s21, %s310_s21 }
  0x29   : > { %p4032_p2 = scmp.lt.s32.totalorder %s4030_s10, %s4023_s24 }
  0x2a   : > { %p4027_p7 = pneg %p4026_p4 }
  0x2b   : > { %p4033_p11 = por %p4032_p2, %p4031_p0 }
  0x2d   : > { %p4034_p10 = pnand %p4033_p11, %p4027_p7 }
  0x2f   : > { %4037 = shalt.err (!%p4034_p10)
}
  0x30   : > { %s4748_s1 = sld [smem:[#allocation22_spill]]  ;;  %s4218_s17 = smov [#allocation6]  }
  0x31   : > { %s263_s18 = sshll.u32 %s4218_s17, 4  ;;  %p4749_p2 = pneg %p4318_p8  ;;  %s264_s18 = int_to_ptr.vmem [resolvable:$true] %s263_s18 }
  0x32   : > { %s4049_s20 = scalar_lea.vmem %s264_s18, 4096  ;;  %p4057_p4 = scmp.lt.s32.totalorder %s264_s18, %s264_s18 }
  0x33   : > { %p4050_p12 = scmp.ne.s32.totalorder %s264_s18, %s4049_s20  ;;  %p4058_p7 = scmp.lt.s32.totalorder %s4049_s20, %s4049_s20 }
  0x35   : > { %p4052_p11 = pnand %p4050_p12, %p4749_p2  ;;  %p4059_p0 = por %p4058_p7, %p4057_p4 }
  0x36   : > { %3786 = dma.hbm_to_vmem [thread:$0]  (!%p4347_p13), %s4748_s1, 2048, %s310_s21, %s4359_s23, %s4735_s15, %s4735_s15, %s4736_s16  }
  0x37   : > { %p4053_p9 = pneg %p4052_p11 }
  0x39   : > { %p4060_p10 = pnand %p4059_p0, %p4053_p9 }
  0x3b   : > { %4063 = shalt.err (!%p4060_p10)
}
  0x3c   : > { %s4219_s24 = smov 128   ;;  %s4220_s21 = smov 8  }
  0x3d   : > { %3779 = dma.hbm_to_vmem [thread:$0]  (!%p4318_p8), %s4724_s0, 4096, %s264_s18, [#allocation7], %s4219_s24, %s4219_s24, %s4220_s21  }
  0x3e   : > { %s108_s14 = sadd.s32 1, %s4200_s26  ;;  %s321_s17 = sand.u32 1, %s4200_s26  }
  0x3f   : > { %s44_s20 = sadd.s32 1, %s4208_s28  ;;  %s2777_s13 = sshll.u32 %s321_s17, 6 }
  0x40   : > { %p46_p12 = scmp.ge.s32.totalorder %s44_s20, 3  ;;  %s3011_s15 = sshll.u32 %s4208_s28, 10 }
  0x41   : > { %s323_s16 = scalar_lea.vmem [#allocation11], %s2777_s13  ;;  %s329_s6 = scalar_lea.hbm %s4726_s2, %s3011_s15 }
  0x42   : > { %s330_s1 = sshll.u32 %s323_s16, 4  ;;  %s4770_s20 = smov (%p46_p12, %s44_s20), 0  ;;  %s331_s1 = int_to_ptr.vmem [resolvable:$true] %s330_s1 }
  0x43   : > { %s105_s12 = ssub.s32 %s4208_s28, %s4770_s20  ;;  %p4066_p8 = pneg %p4353_p1 }
  0x44   : > { %p4394_p2 = scmp.eq.s32.totalorder %s105_s12, 0  ;;  %s4077_s18 = scalar_lea.vmem %s331_s1, 1024 }
  0x45   : > { %p4078_p11 = scmp.ne.s32.totalorder %s331_s1, %s4077_s18  ;;  %s4221_s13 = smov [#allocation11]  }
  0x46   : > { %s4082_s16 = sshll.u32 %s4221_s13, 4  ;;  %s4083_s16 = int_to_ptr.vmem [resolvable:$false] %s4082_s16 }
  0x47   : > { %p4080_p9 = pnand %p4078_p11, %p4066_p8  ;;  %s4084_s24 = scalar_lea.vmem %s4083_s16, 2048 }
  0x48   : > { %p4085_p7 = scmp.lt.s32.totalorder %s331_s1, %s4083_s16  ;;  %p4086_p0 = scmp.lt.s32.totalorder %s4084_s24, %s4077_s18 }
  0x49   : > { %p4081_p4 = pneg %p4080_p9 }
  0x4a   : > { %p4087_p10 = por %p4086_p0, %p4085_p7 }
  0x4c   : > { %p4088_p12 = pnand %p4087_p10, %p4081_p4 }
  0x4e   : > { %4091 = shalt.err (!%p4088_p12)
}
  0x4f   : > { %s4751_s5 = smov 4   ;;  %s4752_s7 = smov 64  }
  0x50   : > { %3789 = dma.hbm_to_vmem [thread:$0]  (!%p4353_p1), %s329_s6, 1024, %s331_s1, %s4359_s23, %s4752_s7, %s4752_s7, %s4751_s5  }
  0x51   : > { %s4411_s15 = scalar_select %p4394_p2, %s4200_s26, %s108_s14  }
  0x52   : > { %s4222_s21 = smov [#allocation12]   ;;  %s4753_s17 = sand.u32 1, %s4212_s29  }
  0x53   : > { %s360_s11 = sshll.u32 %s4222_s21, 4  ;;  %s347_s12 = scalar_lea.sflag [#allocation13], %s4753_s17  ;;  %s361_s11 = int_to_ptr.vmem [resolvable:$true] %s360_s11 }
  0x54   : > { %s4103_s22 = scalar_lea.vmem %s361_s11, 128  ;;  %s4110_s18 = scalar_lea.vmem %s361_s11, 256 }
  0x55   : > { %p4104_p8 = scmp.ne.s32.totalorder %s361_s11, %s4103_s22  ;;  %p4111_p4 = scmp.lt.s32.totalorder %s361_s11, %s361_s11 }
  0x56   : > { %p4112_p7 = scmp.lt.s32.totalorder %s4110_s18, %s4103_s22 }
  0x57   : > { %p4106_p11 = pnand %p4104_p8, %p4014_p3 }
  0x58   : > { %p4113_p0 = por %p4112_p7, %p4111_p4 }
  0x59   : > { %p4107_p9 = pneg %p4106_p11 }
  0x5b   : > { %p4114_p1 = pnand %p4113_p0, %p4107_p9 }
  0x5d   : > { %4117 = shalt.err (!%p4114_p1)
}
  0x5e   : > { %3792 = dma.hbm_to_vmem [thread:$0]  (!%p4347_p13), %s4728_s4, 128, %s361_s11, %s347_s12  }
  0x5f   : > { %369 = sbr.rel (%p4310_p6) target bundleno = 1463 (0x5b7), region = 48  ;;  %p4754_p2 = scmp.eq.s32.totalorder (!%p4310_p6), %s4296_s30, 0 }
  0x64   : > { %4167 = dma.done.wait (%p4754_p2), [#allocation7], 4096   ;;  %p4755_p3 = pmov %p4754_p2 }
  0x65   : > { %s375_s23 = sand.u32 1, %s4296_s30   ;;  %p4756_p10 = pmov %p4754_p2 }
  0x66   : > { %4169 = vsyncadd (%p4755_p3), [#allocation7], 4294963200  ;;  %s376_s14 = scalar_lea.sflag [#allocation10], %s375_s23 }
  0x67   : > { %4171 = dma.done.wait (%p4756_p10), %s376_s14, 2048   ;;  %p4757_p12 = pmov %p4754_p2 }
  0x68   : > { %s386_s19 = sand.u32 1, %s4196_s25  }
  0x69   : > { %4173 = vsyncadd (%p4757_p12), %s376_s14, 4294965248  ;;  %s2784_s9 = sshll.u32 %s386_s19, 6 }
  0x6a   : > { %s4435_s10 = scalar_lea.vmem [#allocation11], %s2784_s9 }
  0x6b   : > { %4175 = dma.done.wait (%p4306_p5), %s376_s14, 1024  }
  0x6c   : > { %4177 = vsyncadd (%p4306_p5), %s376_s14, 4294966272  ;;  %s394_s13 = scalar_lea.sflag [#allocation13], %s375_s23  ;;  %p4758_p6 = pmov %p4754_p2 }
  0x6d   : > { %p4759_p13 = pmov %p4754_p2 }
  0x6e   : > { %4179 = dma.done.wait (%p4758_p6), %s394_s13, 128  }
  0x6f   : > { %4181 = vsyncadd (%p4759_p13), %s394_s13, 4294967168  ;;  %p4760_p8 = pmov %p4754_p2 }
  0x70   : > { %p4761_p11 = pmov %p4754_p2 }
  0x71   : > { %4183 = dma.done.wait (%p4760_p8), [#allocation13], 1024  }
  0x72   : > { %4185 = vsyncadd (%p4761_p11), [#allocation13], 4294966272  ;;  %p446_p5 = scmp.lt.s32.totalorder %s4204_s27, 2  ;;  %s2787_s8 = sadd.s32 4294967295, %s4204_s27 }
  0x73   : > { %p456_p9 = scmp.gt.s32.totalorder %s2787_s8, 0  ;;  %p458_p4 = scmp.lt.s32.totalorder %s4204_s27, 1 }
  0x74   : > { %s4453_s16 = scalar_select %p446_p5, %s4204_s27, 2 }
  0x75   : > { %s4772_s8 = smov (!%p456_p9, %s2787_s8), 0  ;;  %p460_p7 = scmp.eq.s32.totalorder %s4204_s27, 0 }
  0x76   : > { %s448_s7 = scalar_lea.vmem %s4727_s3, %s4453_s16  ;;  %v4223_v0 = vmov (%p460_p7), 0.0  }
  0x77   : > { %s4463_s21 = scalar_select %p458_p4, %s4204_s27, 1  ;;  %469 = vst [vmem:[#allocation5] sm:$0xff] (%p460_p7), %v4223_v0 }
  0x78   : > { %468 = sbr.rel (!%p460_p7) target bundleno = 125 (0x7d), region = 72 }
  0x7d PF: > { %p2790_p0 = scmp.ne.s32.totalorder %s4204_s27, 0 }
  0x7f   : > { %475 = sbr.rel (%p2790_p0) target bundleno = 391 (0x187), region = 80 }
  0x84   : > { %v3864_v1 = vld [vmem:[%s4435_s10 + $0x38] sm:$0xff]   ;;  %v3865_v2 = vld [vmem:[%s4435_s10 + $0x30] sm:$0xff]   ;;  %v3866_v3 = vld [vmem:[%s4435_s10 + $0x28] sm:$0xff]  }
  0x85   : > { %3590 = vmatprep.subr.bf16.mxu0 %v3864_v1  ;;  %3706 = vmatprep.subr.bf16.mxu1 %v3864_v1  ;;  %v3867_v4 = vld [vmem:[%s4435_s10 + $0x20] sm:$0xff]   ;;  %v3868_v7 = vld [vmem:[%s4435_s10 + $0x18] sm:$0xff]   ;;  %v3869_v8 = vld [vmem:[%s4435_s10 + $0x10] sm:$0xff]  }
  0x86   : > { %3591 = vmatpush3.bf16.msra.mxu0 %v3864_v1  ;;  %3714 = vmatpush3.bf16.msra.mxu1 %v3864_v1  ;;  %v3872_v5 = vld [vmem:[#allocation9] sm:$0xff]   ;;  %v3870_v9 = vld [vmem:[%s4435_s10 + $0x8] sm:$0xff]   ;;  %v3876_v13 = vld [vmem:[#allocation9 + $0x10] sm:$0xff]  }
  0x87   : > { %3592 = vmatprep.subr.bf16.mxu0 %v3865_v2  ;;  %3707 = vmatprep.subr.bf16.mxu1 %v3865_v2  ;;  %v3873_v6 = vld [vmem:[#allocation9 + $0x40] sm:$0xff]   ;;  %v3874_v11 = vld [vmem:[#allocation9 + $0x8] sm:$0xff]   ;;  %v3877_v14 = vld [vmem:[#allocation9 + $0x50] sm:$0xff]  }
  0x88   : > { %3606 = vmatprep.mubr.bf16.mxu0 %v3872_v5  ;;  %3622 = vmatprep.mubr.bf16.mxu1 %v3873_v6  ;;  %v3871_v10 = vld [vmem:[%s4435_s10] sm:$0xff]   ;;  %v3875_v12 = vld [vmem:[#allocation9 + $0x48] sm:$0xff]   ;;  %v3878_v15 = vld [vmem:[#allocation9 + $0x18] sm:$0xff]  }
  0x89   : > { %v3879_v16 = vld [vmem:[#allocation9 + $0x58] sm:$0xff]   ;;  %v3880_v17 = vld [vmem:[#allocation9 + $0x20] sm:$0xff]   ;;  %v3882_v19 = vld [vmem:[#allocation9 + $0x28] sm:$0xff]  }
  0x8a   : > { %3593 = vmatpush3.bf16.msra.mxu0 %v3865_v2  ;;  %3715 = vmatpush3.bf16.msra.mxu1 %v3865_v2  ;;  %v3881_v18 = vld [vmem:[#allocation9 + $0x60] sm:$0xff]   ;;  %v3883_v20 = vld [vmem:[#allocation9 + $0x68] sm:$0xff]   ;;  %v3884_v21 = vld [vmem:[#allocation9 + $0x30] sm:$0xff]  }
  0x8b   : > { %3594 = vmatprep.subr.bf16.mxu0 %v3866_v3  ;;  %3708 = vmatprep.subr.bf16.mxu1 %v3866_v3  ;;  %v3885_v22 = vld [vmem:[#allocation9 + $0x70] sm:$0xff]   ;;  %v3886_v23 = vld [vmem:[#allocation9 + $0x38] sm:$0xff]  }
  0x8c   : > { %v3887_v24 = vld [vmem:[#allocation9 + $0x78] sm:$0xff]  }
  0x8e   : > { %3595 = vmatpush3.bf16.msra.mxu0 %v3866_v3  ;;  %3716 = vmatpush3.bf16.msra.mxu1 %v3866_v3 }
  0x8f   : > { %3596 = vmatprep.subr.bf16.mxu0 %v3867_v4  ;;  %3709 = vmatprep.subr.bf16.mxu1 %v3867_v4 }
  0x92   : > { %3597 = vmatpush3.bf16.msra.mxu0 %v3867_v4  ;;  %3717 = vmatpush3.bf16.msra.mxu1 %v3867_v4 }
  0x93   : > { %3598 = vmatprep.subr.bf16.mxu0 %v3868_v7  ;;  %3710 = vmatprep.subr.bf16.mxu1 %v3868_v7 }
  0x96   : > { %3599 = vmatpush3.bf16.msra.mxu0 %v3868_v7  ;;  %3718 = vmatpush3.bf16.msra.mxu1 %v3868_v7 }
  0x97   : > { %3600 = vmatprep.subr.bf16.mxu0 %v3869_v8  ;;  %3711 = vmatprep.subr.bf16.mxu1 %v3869_v8 }
  0x9a   : > { %3601 = vmatpush3.bf16.msra.mxu0 %v3869_v8  ;;  %3719 = vmatpush3.bf16.msra.mxu1 %v3869_v8 }
  0x9b   : > { %3602 = vmatprep.subr.bf16.mxu0 %v3870_v9  ;;  %3712 = vmatprep.subr.bf16.mxu1 %v3870_v9 }
  0x9e   : > { %3603 = vmatpush3.bf16.msra.mxu0 %v3870_v9  ;;  %3720 = vmatpush3.bf16.msra.mxu1 %v3870_v9 }
  0x9f   : > { %3604 = vmatprep.subr.bf16.mxu0 %v3871_v10  ;;  %3713 = vmatprep.subr.bf16.mxu1 %v3871_v10 }
  0xa2   : > { %3605 = vmatpush3.bf16.msra.mxu0 %v3871_v10  ;;  %3721 = vmatpush3.bf16.msra.mxu1 %v3871_v10 }
  0xa5   : > { %3607 = vmatmul.mubr.bf16.vlgmr.msra.gmra.mxu0 %v3874_v11  ;;  %3623 = vmatmul.mubr.bf16.vlgmr.msra.gmra.mxu1 %v3875_v12 }
  0xa6   : > { %3610 = vmatprep.mubr.bf16.mxu0 %v3876_v13  ;;  %3626 = vmatprep.mubr.bf16.mxu1 %v3877_v14 }
  0xad   : > { %3611 = vmatmul.mubr.bf16.gmra.mxu0 %v3878_v15  ;;  %3627 = vmatmul.mubr.bf16.gmra.mxu1 %v3879_v16 }
  0xae   : > { %3614 = vmatprep.mubr.bf16.mxu0 %v3880_v17  ;;  %3630 = vmatprep.mubr.bf16.mxu1 %v3881_v18 }
  0xb5   : > { %3615 = vmatmul.mubr.bf16.gmra.mxu0 %v3882_v19  ;;  %3631 = vmatmul.mubr.bf16.gmra.mxu1 %v3883_v20 }
  0xb6   : > { %3618 = vmatprep.mubr.bf16.mxu0 %v3884_v21  ;;  %3634 = vmatprep.mubr.bf16.mxu1 %v3885_v22 }
  0xbd   : > { %3619 = vmatmul.mubr.bf16.gmra.mxu0 %v3886_v23  ;;  %3635 = vmatmul.mubr.bf16.gmra.mxu1 %v3887_v24 }
 0x165   : > { %v3608_v25 = vpop.f32.mrf.mxu0  ;;  %v3624_v26 = vpop.f32.mrf.mxu1 }
 0x167   : > { %v702_v27 = vpop.f32.mrf.mxu0  ;;  %v766_v28 = vpop.f32.mrf.mxu1 }
 0x169   : > { %v3609_v29 = vpop.f32.mrf.mxu0  ;;  %v3625_v30 = vpop.f32.mrf.mxu1 }
 0x16a   : > { %v3122_v31 = vpack.c.bf16 %v3609_v29, %v3608_v25  ;;  %v3162_v32 = vpack.c.bf16 %v3625_v30, %v3624_v26 }
 0x16b   : > { %v705_v33 = vpop.f32.mrf.mxu0  ;;  %v769_v34 = vpop.f32.mrf.mxu1 }
 0x16c   : > { %3354 = vst [vmem:[#allocation3 + $0x8] sm:$0xff] %v3122_v31   ;;  %3362 = vst [vmem:[#allocation3 + $0x48] sm:$0xff] %v3162_v32   ;;  %v3117_v35 = vpack.c.bf16 %v705_v33, %v702_v27  ;;  %v3157_v36 = vpack.c.bf16 %v769_v34, %v766_v28 }
 0x16d   : > { %v3612_v37 = vpop.f32.mrf.mxu0  ;;  %v3628_v38 = vpop.f32.mrf.mxu1 }
 0x16e   : > { %3118 = vst [vmem:[#allocation3] sm:$0xff] %v3117_v35   ;;  %3361 = vst [vmem:[#allocation3 + $0x40] sm:$0xff] %v3157_v36  }
 0x16f   : > { %v718_v39 = vpop.f32.mrf.mxu0  ;;  %v782_v40 = vpop.f32.mrf.mxu1 }
 0x171   : > { %v3613_v41 = vpop.f32.mrf.mxu0  ;;  %v3629_v42 = vpop.f32.mrf.mxu1 }
 0x172   : > { %v3132_v43 = vpack.c.bf16 %v3613_v41, %v3612_v37  ;;  %v3172_v44 = vpack.c.bf16 %v3629_v42, %v3628_v38 }
 0x173   : > { %v721_v45 = vpop.f32.mrf.mxu0  ;;  %v785_v46 = vpop.f32.mrf.mxu1 }
 0x174   : > { %3356 = vst [vmem:[#allocation3 + $0x18] sm:$0xff] %v3132_v43   ;;  %3364 = vst [vmem:[#allocation3 + $0x58] sm:$0xff] %v3172_v44   ;;  %v3127_v47 = vpack.c.bf16 %v721_v45, %v718_v39  ;;  %v3167_v48 = vpack.c.bf16 %v785_v46, %v782_v40 }
 0x175   : > { %v3616_v49 = vpop.f32.mrf.mxu0  ;;  %v3632_v50 = vpop.f32.mrf.mxu1 }
 0x176   : > { %3355 = vst [vmem:[#allocation3 + $0x10] sm:$0xff] %v3127_v47   ;;  %3363 = vst [vmem:[#allocation3 + $0x50] sm:$0xff] %v3167_v48  }
 0x177   : > { %v734_v51 = vpop.f32.mrf.mxu0  ;;  %v798_v52 = vpop.f32.mrf.mxu1 }
 0x179   : > { %v3617_v53 = vpop.f32.mrf.mxu0  ;;  %v3633_v54 = vpop.f32.mrf.mxu1 }
 0x17a   : > { %v3142_v55 = vpack.c.bf16 %v3617_v53, %v3616_v49  ;;  %v3182_v56 = vpack.c.bf16 %v3633_v54, %v3632_v50 }
 0x17b   : > { %v737_v57 = vpop.f32.mrf.mxu0  ;;  %v801_v58 = vpop.f32.mrf.mxu1 }
 0x17c   : > { %3358 = vst [vmem:[#allocation3 + $0x28] sm:$0xff] %v3142_v55   ;;  %3366 = vst [vmem:[#allocation3 + $0x68] sm:$0xff] %v3182_v56   ;;  %v3137_v59 = vpack.c.bf16 %v737_v57, %v734_v51  ;;  %v3177_v60 = vpack.c.bf16 %v801_v58, %v798_v52 }
 0x17d   : > { %v3620_v61 = vpop.f32.mrf.mxu0  ;;  %v3636_v62 = vpop.f32.mrf.mxu1 }
 0x17e   : > { %3357 = vst [vmem:[#allocation3 + $0x20] sm:$0xff] %v3137_v59   ;;  %3365 = vst [vmem:[#allocation3 + $0x60] sm:$0xff] %v3177_v60  }
 0x17f   : > { %v750_v63 = vpop.f32.mrf.mxu0  ;;  %v814_v0 = vpop.f32.mrf.mxu1 }
 0x181   : > { %v3621_v1 = vpop.f32.mrf.mxu0  ;;  %v3637_v2 = vpop.f32.mrf.mxu1 }
 0x182   : > { %v3152_v3 = vpack.c.bf16 %v3621_v1, %v3620_v61  ;;  %v3192_v4 = vpack.c.bf16 %v3637_v2, %v3636_v62 }
 0x183   : > { %v753_v5 = vpop.f32.mrf.mxu0  ;;  %v817_v6 = vpop.f32.mrf.mxu1 }
 0x184   : > { %3360 = vst [vmem:[#allocation3 + $0x38] sm:$0xff] %v3152_v3   ;;  %3368 = vst [vmem:[#allocation3 + $0x78] sm:$0xff] %v3192_v4   ;;  %v3147_v7 = vpack.c.bf16 %v753_v5, %v750_v63  ;;  %v3187_v8 = vpack.c.bf16 %v817_v6, %v814_v0 }
 0x186   : > { %3359 = vst [vmem:[#allocation3 + $0x30] sm:$0xff] %v3147_v7   ;;  %3367 = vst [vmem:[#allocation3 + $0x70] sm:$0xff] %v3187_v8  }
 0x187 PF: > { %p2847_p1 = scmp.le.s32.totalorder %s4204_s27, 0 }
 0x188   : > { %s3046_s11 = sshll.u32 (!%p2847_p1), %s4772_s8, 7 }
 0x189   : > { %996 = sbr.rel (%p2847_p1) target bundleno = 657 (0x291), region = 84  ;;  %s4480_s17 = scalar_lea.vmem (!%p2847_p1), [#allocation2], %s3046_s11 }
 0x18e   : > { %v3888_v9 = vld [vmem:[%s4435_s10 + $0x38] sm:$0xff]   ;;  %v3889_v10 = vld [vmem:[%s4435_s10 + $0x30] sm:$0xff]   ;;  %v3890_v11 = vld [vmem:[%s4435_s10 + $0x28] sm:$0xff]  }
 0x18f   : > { %3638 = vmatprep.subr.bf16.mxu0 %v3888_v9  ;;  %3722 = vmatprep.subr.bf16.mxu1 %v3888_v9  ;;  %v3891_v12 = vld [vmem:[%s4435_s10 + $0x20] sm:$0xff]   ;;  %v3896_v13 = vld [vmem:[%s4480_s17] sm:$0xff]   ;;  %v3893_v16 = vld [vmem:[%s4435_s10 + $0x10] sm:$0xff]  }
 0x190   : > { %3639 = vmatpush3.bf16.msra.mxu0 %v3888_v9  ;;  %3730 = vmatpush3.bf16.msra.mxu1 %v3888_v9  ;;  %v3897_v14 = vld [vmem:[%s4480_s17 + $0x40] sm:$0xff]   ;;  %v3894_v17 = vld [vmem:[%s4435_s10 + $0x8] sm:$0xff]   ;;  %v3895_v18 = vld [vmem:[%s4435_s10] sm:$0xff]  }
 0x191   : > { %3640 = vmatprep.subr.bf16.mxu0 %v3889_v10  ;;  %3723 = vmatprep.subr.bf16.mxu1 %v3889_v10  ;;  %v3892_v15 = vld [vmem:[%s4435_s10 + $0x18] sm:$0xff]   ;;  %v3898_v19 = vld [vmem:[%s4480_s17 + $0x8] sm:$0xff]   ;;  %v3900_v21 = vld [vmem:[%s4480_s17 + $0x10] sm:$0xff]  }
 0x192   : > { %3654 = vmatprep.mubr.bf16.mxu0 %v3896_v13  ;;  %3670 = vmatprep.mubr.bf16.mxu1 %v3897_v14  ;;  %v3899_v20 = vld [vmem:[%s4480_s17 + $0x48] sm:$0xff]   ;;  %v3901_v22 = vld [vmem:[%s4480_s17 + $0x50] sm:$0xff]   ;;  %v3902_v23 = vld [vmem:[%s4480_s17 + $0x18] sm:$0xff]  }
 0x193   : > { %v3903_v24 = vld [vmem:[%s4480_s17 + $0x58] sm:$0xff]   ;;  %v3904_v25 = vld [vmem:[%s4480_s17 + $0x20] sm:$0xff]   ;;  %v3906_v27 = vld [vmem:[%s4480_s17 + $0x28] sm:$0xff]  }
 0x194   : > { %3641 = vmatpush3.bf16.msra.mxu0 %v3889_v10  ;;  %3731 = vmatpush3.bf16.msra.mxu1 %v3889_v10  ;;  %v3905_v26 = vld [vmem:[%s4480_s17 + $0x60] sm:$0xff]   ;;  %v3907_v28 = vld [vmem:[%s4480_s17 + $0x68] sm:$0xff]   ;;  %v3908_v29 = vld [vmem:[%s4480_s17 + $0x30] sm:$0xff]  }
 0x195   : > { %3642 = vmatprep.subr.bf16.mxu0 %v3890_v11  ;;  %3724 = vmatprep.subr.bf16.mxu1 %v3890_v11  ;;  %v3909_v30 = vld [vmem:[%s4480_s17 + $0x70] sm:$0xff]   ;;  %v3910_v31 = vld [vmem:[%s4480_s17 + $0x38] sm:$0xff]  }
 0x196   : > { %v3911_v32 = vld [vmem:[%s4480_s17 + $0x78] sm:$0xff]  }
 0x198   : > { %3643 = vmatpush3.bf16.msra.mxu0 %v3890_v11  ;;  %3732 = vmatpush3.bf16.msra.mxu1 %v3890_v11 }
 0x199   : > { %3644 = vmatprep.subr.bf16.mxu0 %v3891_v12  ;;  %3725 = vmatprep.subr.bf16.mxu1 %v3891_v12 }
 0x19c   : > { %3645 = vmatpush3.bf16.msra.mxu0 %v3891_v12  ;;  %3733 = vmatpush3.bf16.msra.mxu1 %v3891_v12 }
 0x19d   : > { %3646 = vmatprep.subr.bf16.mxu0 %v3892_v15  ;;  %3726 = vmatprep.subr.bf16.mxu1 %v3892_v15 }
 0x1a0   : > { %3647 = vmatpush3.bf16.msra.mxu0 %v3892_v15  ;;  %3734 = vmatpush3.bf16.msra.mxu1 %v3892_v15 }
 0x1a1   : > { %3648 = vmatprep.subr.bf16.mxu0 %v3893_v16  ;;  %3727 = vmatprep.subr.bf16.mxu1 %v3893_v16 }
 0x1a4   : > { %3649 = vmatpush3.bf16.msra.mxu0 %v3893_v16  ;;  %3735 = vmatpush3.bf16.msra.mxu1 %v3893_v16 }
 0x1a5   : > { %3650 = vmatprep.subr.bf16.mxu0 %v3894_v17  ;;  %3728 = vmatprep.subr.bf16.mxu1 %v3894_v17 }
 0x1a8   : > { %3651 = vmatpush3.bf16.msra.mxu0 %v3894_v17  ;;  %3736 = vmatpush3.bf16.msra.mxu1 %v3894_v17 }
 0x1a9   : > { %3652 = vmatprep.subr.bf16.mxu0 %v3895_v18  ;;  %3729 = vmatprep.subr.bf16.mxu1 %v3895_v18 }
 0x1ac   : > { %3653 = vmatpush3.bf16.msra.mxu0 %v3895_v18  ;;  %3737 = vmatpush3.bf16.msra.mxu1 %v3895_v18 }
 0x1af   : > { %3655 = vmatmul.mubr.bf16.vlgmr.msra.gmra.mxu0 %v3898_v19  ;;  %3671 = vmatmul.mubr.bf16.vlgmr.msra.gmra.mxu1 %v3899_v20 }
 0x1b0   : > { %3658 = vmatprep.mubr.bf16.mxu0 %v3900_v21  ;;  %3674 = vmatprep.mubr.bf16.mxu1 %v3901_v22 }
 0x1b7   : > { %3659 = vmatmul.mubr.bf16.gmra.mxu0 %v3902_v23  ;;  %3675 = vmatmul.mubr.bf16.gmra.mxu1 %v3903_v24 }
 0x1b8   : > { %3662 = vmatprep.mubr.bf16.mxu0 %v3904_v25  ;;  %3678 = vmatprep.mubr.bf16.mxu1 %v3905_v26 }
 0x1bf   : > { %3663 = vmatmul.mubr.bf16.gmra.mxu0 %v3906_v27  ;;  %3679 = vmatmul.mubr.bf16.gmra.mxu1 %v3907_v28 }
 0x1c0   : > { %3666 = vmatprep.mubr.bf16.mxu0 %v3908_v29  ;;  %3682 = vmatprep.mubr.bf16.mxu1 %v3909_v30 }
 0x1c7   : > { %3667 = vmatmul.mubr.bf16.gmra.mxu0 %v3910_v31  ;;  %3683 = vmatmul.mubr.bf16.gmra.mxu1 %v3911_v32 }
 0x26f   : > { %v3656_v33 = vpop.f32.mrf.mxu0  ;;  %v3672_v34 = vpop.f32.mrf.mxu1 }
 0x271   : > { %v1229_v35 = vpop.f32.mrf.mxu0  ;;  %v1293_v36 = vpop.f32.mrf.mxu1 }
 0x273   : > { %v3657_v37 = vpop.f32.mrf.mxu0  ;;  %v3673_v38 = vpop.f32.mrf.mxu1 }
 0x274   : > { %v3202_v39 = vpack.c.bf16 %v3657_v37, %v3656_v33  ;;  %v3242_v40 = vpack.c.bf16 %v3673_v38, %v3672_v34 }
 0x275   : > { %v1232_v41 = vpop.f32.mrf.mxu0  ;;  %v1296_v42 = vpop.f32.mrf.mxu1 }
 0x276   : > { %3369 = vst [vmem:[#allocation3 + $0x8] sm:$0xff] %v3202_v39   ;;  %3377 = vst [vmem:[#allocation3 + $0x48] sm:$0xff] %v3242_v40   ;;  %v3197_v43 = vpack.c.bf16 %v1232_v41, %v1229_v35  ;;  %v3237_v44 = vpack.c.bf16 %v1296_v42, %v1293_v36 }
 0x277   : > { %v3660_v45 = vpop.f32.mrf.mxu0  ;;  %v3676_v46 = vpop.f32.mrf.mxu1 }
 0x278   : > { %3198 = vst [vmem:[#allocation3] sm:$0xff] %v3197_v43   ;;  %3376 = vst [vmem:[#allocation3 + $0x40] sm:$0xff] %v3237_v44  }
 0x279   : > { %v1245_v47 = vpop.f32.mrf.mxu0  ;;  %v1309_v48 = vpop.f32.mrf.mxu1 }
 0x27b   : > { %v3661_v49 = vpop.f32.mrf.mxu0  ;;  %v3677_v50 = vpop.f32.mrf.mxu1 }
 0x27c   : > { %v3212_v51 = vpack.c.bf16 %v3661_v49, %v3660_v45  ;;  %v3252_v52 = vpack.c.bf16 %v3677_v50, %v3676_v46 }
 0x27d   : > { %v1248_v53 = vpop.f32.mrf.mxu0  ;;  %v1312_v54 = vpop.f32.mrf.mxu1 }
 0x27e   : > { %3371 = vst [vmem:[#allocation3 + $0x18] sm:$0xff] %v3212_v51   ;;  %3379 = vst [vmem:[#allocation3 + $0x58] sm:$0xff] %v3252_v52   ;;  %v3207_v55 = vpack.c.bf16 %v1248_v53, %v1245_v47  ;;  %v3247_v56 = vpack.c.bf16 %v1312_v54, %v1309_v48 }
 0x27f   : > { %v3664_v57 = vpop.f32.mrf.mxu0  ;;  %v3680_v58 = vpop.f32.mrf.mxu1 }
 0x280   : > { %3370 = vst [vmem:[#allocation3 + $0x10] sm:$0xff] %v3207_v55   ;;  %3378 = vst [vmem:[#allocation3 + $0x50] sm:$0xff] %v3247_v56  }
 0x281   : > { %v1261_v59 = vpop.f32.mrf.mxu0  ;;  %v1325_v60 = vpop.f32.mrf.mxu1 }
 0x283   : > { %v3665_v61 = vpop.f32.mrf.mxu0  ;;  %v3681_v62 = vpop.f32.mrf.mxu1 }
 0x284   : > { %v3222_v63 = vpack.c.bf16 %v3665_v61, %v3664_v57  ;;  %v3262_v0 = vpack.c.bf16 %v3681_v62, %v3680_v58 }
 0x285   : > { %v1264_v1 = vpop.f32.mrf.mxu0  ;;  %v1328_v2 = vpop.f32.mrf.mxu1 }
 0x286   : > { %3373 = vst [vmem:[#allocation3 + $0x28] sm:$0xff] %v3222_v63   ;;  %3381 = vst [vmem:[#allocation3 + $0x68] sm:$0xff] %v3262_v0   ;;  %v3217_v3 = vpack.c.bf16 %v1264_v1, %v1261_v59  ;;  %v3257_v4 = vpack.c.bf16 %v1328_v2, %v1325_v60 }
 0x287   : > { %v3668_v5 = vpop.f32.mrf.mxu0  ;;  %v3684_v6 = vpop.f32.mrf.mxu1 }
 0x288   : > { %3372 = vst [vmem:[#allocation3 + $0x20] sm:$0xff] %v3217_v3   ;;  %3380 = vst [vmem:[#allocation3 + $0x60] sm:$0xff] %v3257_v4  }
 0x289   : > { %v1277_v7 = vpop.f32.mrf.mxu0  ;;  %v1341_v8 = vpop.f32.mrf.mxu1 }
 0x28b   : > { %v3669_v9 = vpop.f32.mrf.mxu0  ;;  %v3685_v10 = vpop.f32.mrf.mxu1 }
 0x28c   : > { %v3232_v11 = vpack.c.bf16 %v3669_v9, %v3668_v5  ;;  %v3272_v12 = vpack.c.bf16 %v3685_v10, %v3684_v6 }
 0x28d   : > { %v1280_v13 = vpop.f32.mrf.mxu0  ;;  %v1344_v14 = vpop.f32.mrf.mxu1 }
 0x28e   : > { %3375 = vst [vmem:[#allocation3 + $0x38] sm:$0xff] %v3232_v11   ;;  %3383 = vst [vmem:[#allocation3 + $0x78] sm:$0xff] %v3272_v12   ;;  %v3227_v15 = vpack.c.bf16 %v1280_v13, %v1277_v7  ;;  %v3267_v16 = vpack.c.bf16 %v1344_v14, %v1341_v8 }
 0x290   : > { %3374 = vst [vmem:[#allocation3 + $0x30] sm:$0xff] %v3227_v15   ;;  %3382 = vst [vmem:[#allocation3 + $0x70] sm:$0xff] %v3267_v16  }
 0x291 PF: > { %v3916_v21 = vld [vmem:[#allocation3 + $0x68] sm:$0xff]   ;;  %v3918_v23 = vld [vmem:[#allocation3 + $0x60] sm:$0xff]   ;;  %v3920_v25 = vld [vmem:[#allocation3 + $0x58] sm:$0xff]   ;;  %p2955_p2 = scmp.ge.s32.totalorder %s4204_s27, 2 }
 0x292   : > { %v3917_v22 = vld [vmem:[#allocation3 + $0x28] sm:$0xff]   ;;  %v3919_v24 = vld [vmem:[#allocation3 + $0x20] sm:$0xff]   ;;  %v3921_v26 = vld [vmem:[#allocation3 + $0x18] sm:$0xff]   ;;  %s3111_s18 = sshll.u32 (!%p2955_p2), %s4463_s21, 7 }
 0x293   : > { %v3922_v27 = vld [vmem:[#allocation3 + $0x50] sm:$0xff]   ;;  %v3924_v31 = vld [vmem:[#allocation3 + $0x48] sm:$0xff]   ;;  %v3926_v33 = vld [vmem:[#allocation3 + $0x40] sm:$0xff]   ;;  %s4619_s1 = scalar_lea.vmem (!%p2955_p2), [#allocation2], %s3111_s18 }
 0x294   : > { %v3930_v28 = vld [vmem:[#allocation6 + $0x4] ss:$8 sps:$4 sm:$0xff]   ;;  %v3927_v34 = vld [vmem:[#allocation3] sm:$0xff]   ;;  %v3928_v35 = vld [vmem:[#allocation6] ss:$8 sps:$4 sm:$0xff]  }
 0x295   : > { %v3912_v17 = vld [vmem:[#allocation3 + $0x78] sm:$0xff]   ;;  %v3933_v29 = vld [vmem:[#allocation6 + $0x84] ss:$8 sps:$4 sm:$0xff]   ;;  %1949 = vmatprep.mubr.bf16.mxu0 %v3930_v28  ;;  %v3931_v36 = vld [vmem:[#allocation6 + $0x80] ss:$8 sps:$4 sm:$0xff]  }
 0x296   : > { %v3913_v18 = vld [vmem:[#allocation3 + $0x38] sm:$0xff]   ;;  %3447 = vmatprep.subr.bf16.mxu0 %v3912_v17  ;;  %3738 = vmatprep.subr.bf16.mxu1 %v3912_v17  ;;  %v3923_v30 = vld [vmem:[#allocation3 + $0x10] sm:$0xff]   ;;  %v3925_v32 = vld [vmem:[#allocation3 + $0x8] sm:$0xff]  }
 0x297   : > { %v3914_v19 = vld [vmem:[#allocation3 + $0x70] sm:$0xff]   ;;  %3448 = vmatpush3.bf16.msra.mxu0 %v3913_v18  ;;  %3746 = vmatpush3.bf16.msra.mxu1 %v3913_v18  ;;  %v3934_v37 = vld [vmem:[#allocation6 + $0x14] ss:$8 sps:$4 sm:$0xff]   ;;  %v3938_v39 = vld [vmem:[#allocation6 + $0x10] ss:$8 sps:$4 sm:$0xff]  }
 0x298   : > { %v3915_v20 = vld [vmem:[#allocation3 + $0x30] sm:$0xff]   ;;  %3449 = vmatprep.subr.bf16.mxu0 %v3914_v19  ;;  %3739 = vmatprep.subr.bf16.mxu1 %v3914_v19  ;;  %v3936_v38 = vld [vmem:[#allocation6 + $0x94] ss:$8 sps:$4 sm:$0xff]   ;;  %v3939_v40 = vld [vmem:[#allocation6 + $0x90] ss:$8 sps:$4 sm:$0xff]  }
 0x299   : > { %2013 = vmatprep.mubr.bf16.mxu1 %v3933_v29  ;;  %v3940_v41 = vld [vmem:[#allocation6 + $0x24] ss:$8 sps:$4 sm:$0xff]   ;;  %v3944_v43 = vld [vmem:[#allocation6 + $0x20] ss:$8 sps:$4 sm:$0xff]   ;;  %v3946_v45 = vld [vmem:[#allocation6 + $0x34] ss:$8 sps:$4 sm:$0xff]  }
 0x29a   : > { %v3942_v42 = vld [vmem:[#allocation6 + $0xa4] ss:$8 sps:$4 sm:$0xff]   ;;  %v3945_v44 = vld [vmem:[#allocation6 + $0xa0] ss:$8 sps:$4 sm:$0xff]   ;;  %v3948_v46 = vld [vmem:[#allocation6 + $0xb4] ss:$8 sps:$4 sm:$0xff]  }
 0x29b   : > { %3450 = vmatpush3.bf16.msra.mxu0 %v3915_v20  ;;  %3747 = vmatpush3.bf16.msra.mxu1 %v3915_v20  ;;  %v3950_v47 = vld [vmem:[#allocation6 + $0x30] ss:$8 sps:$4 sm:$0xff]   ;;  %v3952_v49 = vld [vmem:[#allocation6 + $0x44] ss:$8 sps:$4 sm:$0xff]   ;;  %v3956_v51 = vld [vmem:[#allocation6 + $0x40] ss:$8 sps:$4 sm:$0xff]  }
 0x29c   : > { %3451 = vmatprep.subr.bf16.mxu0 %v3916_v21  ;;  %3740 = vmatprep.subr.bf16.mxu1 %v3916_v21  ;;  %v3951_v48 = vld [vmem:[#allocation6 + $0xb0] ss:$8 sps:$4 sm:$0xff]   ;;  %v3954_v50 = vld [vmem:[#allocation6 + $0xc4] ss:$8 sps:$4 sm:$0xff]   ;;  %v3957_v52 = vld [vmem:[#allocation6 + $0xc0] ss:$8 sps:$4 sm:$0xff]  }
 0x29d   : > { %v3958_v53 = vld [vmem:[#allocation6 + $0x54] ss:$8 sps:$4 sm:$0xff]   ;;  %v3962_v55 = vld [vmem:[#allocation6 + $0x50] ss:$8 sps:$4 sm:$0xff]   ;;  %v3964_v57 = vld [vmem:[#allocation6 + $0x64] ss:$8 sps:$4 sm:$0xff]  }
 0x29e   : > { %v3960_v54 = vld [vmem:[#allocation6 + $0xd4] ss:$8 sps:$4 sm:$0xff]   ;;  %v3963_v56 = vld [vmem:[#allocation6 + $0xd0] ss:$8 sps:$4 sm:$0xff]   ;;  %v3966_v58 = vld [vmem:[#allocation6 + $0xe4] ss:$8 sps:$4 sm:$0xff]  }
 0x29f   : > { %3452 = vmatpush3.bf16.msra.mxu0 %v3917_v22  ;;  %3748 = vmatpush3.bf16.msra.mxu1 %v3917_v22  ;;  %v3968_v59 = vld [vmem:[#allocation6 + $0x60] ss:$8 sps:$4 sm:$0xff]   ;;  %v3970_v61 = vld [vmem:[#allocation6 + $0x74] ss:$8 sps:$4 sm:$0xff]   ;;  %v3974_v63 = vld [vmem:[#allocation6 + $0x70] ss:$8 sps:$4 sm:$0xff]  }
 0x2a0   : > { %3453 = vmatprep.subr.bf16.mxu0 %v3918_v23  ;;  %3741 = vmatprep.subr.bf16.mxu1 %v3918_v23  ;;  %v3969_v60 = vld [vmem:[#allocation6 + $0xe0] ss:$8 sps:$4 sm:$0xff]   ;;  %v3972_v62 = vld [vmem:[#allocation6 + $0xf4] ss:$8 sps:$4 sm:$0xff]   ;;  %v3975_v0 = vld [vmem:[#allocation6 + $0xf0] ss:$8 sps:$4 sm:$0xff]  }
 0x2a1   : > { %v4507_v4 = vld [vmem:[%s448_s7] ss:$0 sm:$0xff] }
 0x2a3   : > { %3454 = vmatpush3.bf16.msra.mxu0 %v3919_v24  ;;  %3749 = vmatpush3.bf16.msra.mxu1 %v3919_v24 }
 0x2a4   : > { %3455 = vmatprep.subr.bf16.mxu0 %v3920_v25  ;;  %3742 = vmatprep.subr.bf16.mxu1 %v3920_v25 }
 0x2a7   : > { %3456 = vmatpush3.bf16.msra.mxu0 %v3921_v26  ;;  %3750 = vmatpush3.bf16.msra.mxu1 %v3921_v26 }
 0x2a8   : > { %3457 = vmatprep.subr.bf16.mxu0 %v3922_v27  ;;  %3743 = vmatprep.subr.bf16.mxu1 %v3922_v27 }
 0x2ab   : > { %3458 = vmatpush3.bf16.msra.mxu0 %v3923_v30  ;;  %3751 = vmatpush3.bf16.msra.mxu1 %v3923_v30 }
 0x2ac   : > { %3459 = vmatprep.subr.bf16.mxu0 %v3924_v31  ;;  %3744 = vmatprep.subr.bf16.mxu1 %v3924_v31 }
 0x2af   : > { %3460 = vmatpush3.bf16.msra.mxu0 %v3925_v32  ;;  %3752 = vmatpush3.bf16.msra.mxu1 %v3925_v32 }
 0x2b0   : > { %3461 = vmatprep.subr.bf16.mxu0 %v3926_v33  ;;  %3745 = vmatprep.subr.bf16.mxu1 %v3926_v33 }
 0x2b3   : > { %3462 = vmatpush3.bf16.msra.mxu0 %v3927_v34  ;;  %3753 = vmatpush3.bf16.msra.mxu1 %v3927_v34 }
 0x2b6   : > { %1950 = vmatmul.mubr.bf16.vlgmr.msra.gmra.mxu0 %v3928_v35  ;;  %2014 = vmatmul.mubr.bf16.vlgmr.msra.gmra.mxu1 %v3931_v36 }
 0x2b7   : > { %1957 = vmatprep.mubr.bf16.mxu0 %v3934_v37  ;;  %2021 = vmatprep.mubr.bf16.mxu1 %v3936_v38 }
 0x2be   : > { %1958 = vmatmul.mubr.bf16.gmra.mxu0 %v3938_v39  ;;  %2022 = vmatmul.mubr.bf16.gmra.mxu1 %v3939_v40 }
 0x2bf   : > { %1965 = vmatprep.mubr.bf16.mxu0 %v3940_v41  ;;  %2029 = vmatprep.mubr.bf16.mxu1 %v3942_v42 }
 0x2c6   : > { %1966 = vmatmul.mubr.bf16.gmra.mxu0 %v3944_v43  ;;  %2030 = vmatmul.mubr.bf16.gmra.mxu1 %v3945_v44 }
 0x2c7   : > { %1973 = vmatprep.mubr.bf16.mxu0 %v3946_v45  ;;  %2037 = vmatprep.mubr.bf16.mxu1 %v3948_v46 }
 0x2ce   : > { %1974 = vmatmul.mubr.bf16.gmra.mxu0 %v3950_v47  ;;  %2038 = vmatmul.mubr.bf16.gmra.mxu1 %v3951_v48 }
 0x2cf   : > { %1981 = vmatprep.mubr.bf16.mxu0 %v3952_v49  ;;  %2045 = vmatprep.mubr.bf16.mxu1 %v3954_v50 }
 0x2d6   : > { %1982 = vmatmul.mubr.bf16.gmra.mxu0 %v3956_v51  ;;  %2046 = vmatmul.mubr.bf16.gmra.mxu1 %v3957_v52 }
 0x2d7   : > { %1989 = vmatprep.mubr.bf16.mxu0 %v3958_v53  ;;  %2053 = vmatprep.mubr.bf16.mxu1 %v3960_v54 }
 0x2de   : > { %1990 = vmatmul.mubr.bf16.gmra.mxu0 %v3962_v55  ;;  %2054 = vmatmul.mubr.bf16.gmra.mxu1 %v3963_v56 }
 0x2df   : > { %1997 = vmatprep.mubr.bf16.mxu0 %v3964_v57  ;;  %2061 = vmatprep.mubr.bf16.mxu1 %v3966_v58 }
 0x2e6   : > { %1998 = vmatmul.mubr.bf16.gmra.mxu0 %v3968_v59  ;;  %2062 = vmatmul.mubr.bf16.gmra.mxu1 %v3969_v60 }
 0x2e7   : > { %2005 = vmatprep.mubr.bf16.mxu0 %v3970_v61  ;;  %2069 = vmatprep.mubr.bf16.mxu1 %v3972_v62 }
 0x2ee   : > { %2006 = vmatmul.mubr.bf16.gmra.mxu0 %v3974_v63  ;;  %2070 = vmatmul.mubr.bf16.gmra.mxu1 %v3975_v0 }
 0x376   : > { %v3463_v1 = vpop.f32.mrf.mxu0  ;;  %v3511_v2 = vpop.f32.mrf.mxu1 }
 0x378   : > { %v3464_v3 = vpop.f32.mrf.mxu0  ;;  %v3512_v5 = vpop.f32.mrf.mxu1 }
 0x379   : > { %v3465_v6 = vadd.f32 %v3464_v3, %v3463_v1  ;;  %v3513_v7 = vadd.f32 %v3512_v5, %v3511_v2 }
 0x37a   : > { %v3466_v8 = vpop.f32.mrf.mxu0  ;;  %v3514_v9 = vpop.f32.mrf.mxu1 }
 0x37b   : > { %v4510_v10 = vadd.f32 %v3465_v6, %v4507_v4  ;;  %v4513_v11 = vadd.f32 %v3513_v7, %v4507_v4 }
 0x37c   : > { %v3467_v12 = vpop.f32.mrf.mxu0  ;;  %v3515_v13 = vpop.f32.mrf.mxu1 }
 0x37d   : > { %v3468_v14 = vadd.f32 %v3467_v12, %v3466_v8  ;;  %v3516_v15 = vadd.f32 %v3515_v13, %v3514_v9 }
 0x37e   : > { %v3469_v16 = vpop.f32.mrf.mxu0  ;;  %v3517_v17 = vpop.f32.mrf.mxu1 }
 0x37f   : > { %v4516_v18 = vadd.f32 %v3468_v14, %v4507_v4  ;;  %v4519_v19 = vadd.f32 %v3516_v15, %v4507_v4 }
 0x380   : > { %v3470_v20 = vpop.f32.mrf.mxu0  ;;  %v3518_v21 = vpop.f32.mrf.mxu1 }
 0x381   : > { %v3471_v22 = vadd.f32 %v3470_v20, %v3469_v16  ;;  %v3519_v23 = vadd.f32 %v3518_v21, %v3517_v17 }
 0x382   : > { %v3472_v24 = vpop.f32.mrf.mxu0  ;;  %v3520_v25 = vpop.f32.mrf.mxu1 }
 0x383   : > { %v4522_v26 = vadd.f32 %v3471_v22, %v4507_v4  ;;  %v4525_v27 = vadd.f32 %v3519_v23, %v4507_v4 }
 0x384   : > { %v3473_v28 = vpop.f32.mrf.mxu0  ;;  %v3521_v29 = vpop.f32.mrf.mxu1 }
 0x385   : > { %v3474_v30 = vadd.f32 %v3473_v28, %v3472_v24  ;;  %v3522_v31 = vadd.f32 %v3521_v29, %v3520_v25 }
 0x386   : > { %v3475_v32 = vpop.f32.mrf.mxu0  ;;  %v3523_v33 = vpop.f32.mrf.mxu1 }
 0x387   : > { %v4528_v34 = vadd.f32 %v3474_v30, %v4507_v4  ;;  %v4531_v35 = vadd.f32 %v3522_v31, %v4507_v4 }
 0x388   : > { %v3476_v36 = vpop.f32.mrf.mxu0  ;;  %v3524_v37 = vpop.f32.mrf.mxu1 }
 0x389   : > { %v3477_v38 = vadd.f32 %v3476_v36, %v3475_v32  ;;  %v3525_v39 = vadd.f32 %v3524_v37, %v3523_v33 }
 0x38a   : > { %v3478_v40 = vpop.f32.mrf.mxu0  ;;  %v3526_v41 = vpop.f32.mrf.mxu1 }
 0x38b   : > { %v4534_v42 = vadd.f32 %v3477_v38, %v4507_v4  ;;  %v4537_v43 = vadd.f32 %v3525_v39, %v4507_v4 }
 0x38c   : > { %v3479_v44 = vpop.f32.mrf.mxu0  ;;  %v3527_v45 = vpop.f32.mrf.mxu1 }
 0x38d   : > { %v3480_v46 = vadd.f32 %v3479_v44, %v3478_v40  ;;  %v3528_v47 = vadd.f32 %v3527_v45, %v3526_v41 }
 0x38e   : > { %v3481_v48 = vpop.f32.mrf.mxu0  ;;  %v3529_v49 = vpop.f32.mrf.mxu1 }
 0x38f   : > { %v4540_v50 = vadd.f32 %v3480_v46, %v4507_v4  ;;  %v4543_v51 = vadd.f32 %v3528_v47, %v4507_v4 }
 0x390   : > { %v3482_v52 = vpop.f32.mrf.mxu0  ;;  %v3530_v53 = vpop.f32.mrf.mxu1 }
 0x391   : > { %v3483_v54 = vadd.f32 %v3482_v52, %v3481_v48  ;;  %v3531_v55 = vadd.f32 %v3530_v53, %v3529_v49 }
 0x392   : > { %v3484_v56 = vpop.f32.mrf.mxu0  ;;  %v3532_v57 = vpop.f32.mrf.mxu1 }
 0x393   : > { %v4546_v58 = vadd.f32 %v3483_v54, %v4507_v4  ;;  %v4549_v59 = vadd.f32 %v3531_v55, %v4507_v4 }
 0x394   : > { %v3485_v60 = vpop.f32.mrf.mxu0  ;;  %v3533_v61 = vpop.f32.mrf.mxu1 }
 0x395   : > { %v3486_v62 = vadd.f32 %v3485_v60, %v3484_v56  ;;  %v3534_v63 = vadd.f32 %v3533_v61, %v3532_v57 }
 0x396   : > { %v3487_v0 = vpop.f32.mrf.mxu0  ;;  %v3535_v1 = vpop.f32.mrf.mxu1 }
 0x397   : > { %v4552_v2 = vadd.f32 %v3486_v62, %v4507_v4  ;;  %v4555_v3 = vadd.f32 %v3534_v63, %v4507_v4 }
 0x398   : > { %v3488_v5 = vpop.f32.mrf.mxu0  ;;  %v3536_v6 = vpop.f32.mrf.mxu1 }
 0x399   : > { %v3489_v7 = vadd.f32 %v3488_v5, %v3487_v0  ;;  %v3537_v8 = vadd.f32 %v3536_v6, %v3535_v1 }
 0x39a   : > { %v3490_v9 = vpop.f32.mrf.mxu0  ;;  %v3538_v12 = vpop.f32.mrf.mxu1 }
 0x39b   : > { %v4558_v13 = vadd.f32 %v3489_v7, %v4507_v4  ;;  %v4561_v14 = vadd.f32 %v3537_v8, %v4507_v4 }
 0x39c   : > { %v3491_v15 = vpop.f32.mrf.mxu0  ;;  %v3539_v16 = vpop.f32.mrf.mxu1 }
 0x39d   : > { %v3492_v17 = vadd.f32 %v3491_v15, %v3490_v9  ;;  %v3540_v20 = vadd.f32 %v3539_v16, %v3538_v12 }
 0x39e   : > { %v3493_v21 = vpop.f32.mrf.mxu0  ;;  %v3541_v22 = vpop.f32.mrf.mxu1 }
 0x39f   : > { %v4564_v23 = vadd.f32 %v3492_v17, %v4507_v4  ;;  %v4567_v24 = vadd.f32 %v3540_v20, %v4507_v4 }
 0x3a0   : > { %v3494_v25 = vpop.f32.mrf.mxu0  ;;  %v3542_v28 = vpop.f32.mrf.mxu1 }
 0x3a1   : > { %v3495_v29 = vadd.f32 %v3494_v25, %v3493_v21  ;;  %v3543_v30 = vadd.f32 %v3542_v28, %v3541_v22 }
 0x3a2   : > { %v3496_v31 = vpop.f32.mrf.mxu0  ;;  %v3544_v32 = vpop.f32.mrf.mxu1 }
 0x3a3   : > { %v4570_v33 = vadd.f32 %v3495_v29, %v4507_v4  ;;  %v4573_v36 = vadd.f32 %v3543_v30, %v4507_v4 }
 0x3a4   : > { %v3497_v37 = vpop.f32.mrf.mxu0  ;;  %v3545_v38 = vpop.f32.mrf.mxu1 }
 0x3a5   : > { %v3498_v39 = vadd.f32 %v3497_v37, %v3496_v31  ;;  %v3546_v40 = vadd.f32 %v3545_v38, %v3544_v32 }
 0x3a6   : > { %v3499_v41 = vpop.f32.mrf.mxu0  ;;  %v3547_v44 = vpop.f32.mrf.mxu1 }
 0x3a7   : > { %v4576_v45 = vadd.f32 %v3498_v39, %v4507_v4  ;;  %v4579_v46 = vadd.f32 %v3546_v40, %v4507_v4 }
 0x3a8   : > { %v3500_v47 = vpop.f32.mrf.mxu0  ;;  %v3548_v48 = vpop.f32.mrf.mxu1 }
 0x3a9   : > { %v3501_v49 = vadd.f32 %v3500_v47, %v3499_v41  ;;  %v3549_v52 = vadd.f32 %v3548_v48, %v3547_v44 }
 0x3aa   : > { %v3502_v53 = vpop.f32.mrf.mxu0  ;;  %v3550_v54 = vpop.f32.mrf.mxu1 }
 0x3ab   : > { %v4582_v55 = vadd.f32 %v3501_v49, %v4507_v4  ;;  %v4585_v56 = vadd.f32 %v3549_v52, %v4507_v4 }
 0x3ac   : > { %v3503_v57 = vpop.f32.mrf.mxu0  ;;  %v3551_v60 = vpop.f32.mrf.mxu1 }
 0x3ad   : > { %v3504_v61 = vadd.f32 %v3503_v57, %v3502_v53  ;;  %v3552_v62 = vadd.f32 %v3551_v60, %v3550_v54 }
 0x3ae   : > { %v3505_v63 = vpop.f32.mrf.mxu0  ;;  %v3553_v0 = vpop.f32.mrf.mxu1 }
 0x3af   : > { %v4588_v1 = vadd.f32 %v3504_v61, %v4507_v4  ;;  %v4591_v5 = vadd.f32 %v3552_v62, %v4507_v4 }
 0x3b0   : > { %v3506_v6 = vpop.f32.mrf.mxu0  ;;  %v3554_v7 = vpop.f32.mrf.mxu1 }
 0x3b1   : > { %v3507_v8 = vadd.f32 %v3506_v6, %v3505_v63  ;;  %v3555_v9 = vadd.f32 %v3554_v7, %v3553_v0 }
 0x3b2   : > { %v3508_v12 = vpop.f32.mrf.mxu0  ;;  %v3556_v15 = vpop.f32.mrf.mxu1 }
 0x3b3   : > { %v4594_v16 = vadd.f32 %v3507_v8, %v4507_v4  ;;  %v4597_v17 = vadd.f32 %v3555_v9, %v4507_v4  ;;  %2219 = sbr.rel (%p2955_p2) target bundleno = 968 (0x3c8), region = 96 }
 0x3b4   : > { %v3509_v20 = vpop.f32.mrf.mxu0  ;;  %v3557_v21 = vpop.f32.mrf.mxu1 }
 0x3b5   : > { %v3510_v22 = vadd.f32 %v3509_v20, %v3508_v12  ;;  %v3558_v25 = vadd.f32 %v3557_v21, %v3556_v15 }
 0x3b7   : > { %v4600_v28 = vadd.f32 %v3510_v22, %v4507_v4  ;;  %v4603_v29 = vadd.f32 %v3558_v25, %v4507_v4 }
 0x3b8   : > { %v2220_v30 = vmax.f32 %v4510_v10, 0.0  ;;  %v2221_v31 = vmax.f32 %v4516_v18, 0.0  ;;  %v2222_v32 = vmax.f32 %v4522_v26, 0.0  ;;  %v2223_v37 = vmax.f32 %v4528_v34, 0.0 }
 0x3b9   : > { %v2224_v38 = vmax.f32 %v4534_v42, 0.0  ;;  %v2225_v39 = vmax.f32 %v4540_v50, 0.0  ;;  %v2226_v4 = vmax.f32 %v4546_v58, 0.0  ;;  %v2227_v40 = vmax.f32 %v4552_v2, 0.0 }
 0x3ba   : > { %v3277_v41 = vpack.c.bf16 %v2221_v31, %v2220_v30  ;;  %v3282_v44 = vpack.c.bf16 %v2223_v37, %v2222_v32  ;;  %v2228_v47 = vmax.f32 %v4558_v13, 0.0  ;;  %v2229_v48 = vmax.f32 %v4564_v23, 0.0 }
 0x3bb   : > { %v3287_v49 = vpack.c.bf16 %v2225_v39, %v2224_v38  ;;  %v3292_v52 = vpack.c.bf16 %v2227_v40, %v2226_v4  ;;  %v2230_v53 = vmax.f32 %v4570_v33, 0.0  ;;  %v2231_v54 = vmax.f32 %v4576_v45, 0.0 }
 0x3bc   : > { %3278 = vst [vmem:[%s4619_s1] sm:$0xff] %v3277_v41   ;;  %3384 = vst [vmem:[%s4619_s1 + $0x8] sm:$0xff] %v3282_v44   ;;  %v3297_v57 = vpack.c.bf16 %v2229_v48, %v2228_v47  ;;  %v2232_v60 = vmax.f32 %v4582_v55, 0.0  ;;  %v2233_v61 = vmax.f32 %v4588_v1, 0.0  ;;  %v2234_v62 = vmax.f32 %v4594_v16, 0.0 }
 0x3bd   : > { %3385 = vst [vmem:[%s4619_s1 + $0x10] sm:$0xff] %v3287_v49   ;;  %3386 = vst [vmem:[%s4619_s1 + $0x18] sm:$0xff] %v3292_v52   ;;  %v3302_v63 = vpack.c.bf16 %v2231_v54, %v2230_v53  ;;  %v2235_v0 = vmax.f32 %v4600_v28, 0.0  ;;  %v2236_v6 = vmax.f32 %v4513_v11, 0.0  ;;  %v2237_v7 = vmax.f32 %v4519_v19, 0.0 }
 0x3be   : > { %3387 = vst [vmem:[%s4619_s1 + $0x20] sm:$0xff] %v3297_v57   ;;  %v3307_v8 = vpack.c.bf16 %v2233_v61, %v2232_v60  ;;  %v2238_v9 = vmax.f32 %v4525_v27, 0.0  ;;  %v2239_v12 = vmax.f32 %v4531_v35, 0.0  ;;  %v2240_v15 = vmax.f32 %v4537_v43, 0.0 }
 0x3bf   : > { %3388 = vst [vmem:[%s4619_s1 + $0x28] sm:$0xff] %v3302_v63   ;;  %v3312_v20 = vpack.c.bf16 %v2235_v0, %v2234_v62  ;;  %v3317_v21 = vpack.c.bf16 %v2237_v7, %v2236_v6  ;;  %v2241_v22 = vmax.f32 %v4543_v51, 0.0  ;;  %v2242_v25 = vmax.f32 %v4549_v59, 0.0 }
 0x3c0   : > { %3389 = vst [vmem:[%s4619_s1 + $0x30] sm:$0xff] %v3307_v8   ;;  %v3322_v30 = vpack.c.bf16 %v2239_v12, %v2238_v9  ;;  %v2243_v31 = vmax.f32 %v4555_v3, 0.0  ;;  %v2244_v32 = vmax.f32 %v4561_v14, 0.0  ;;  %v2245_v37 = vmax.f32 %v4567_v24, 0.0 }
 0x3c1   : > { %3390 = vst [vmem:[%s4619_s1 + $0x38] sm:$0xff] %v3312_v20   ;;  %3391 = vst [vmem:[%s4619_s1 + $0x40] sm:$0xff] %v3317_v21   ;;  %v3327_v38 = vpack.c.bf16 %v2241_v22, %v2240_v15  ;;  %v2246_v39 = vmax.f32 %v4573_v36, 0.0  ;;  %v2247_v4 = vmax.f32 %v4579_v46, 0.0  ;;  %v2248_v40 = vmax.f32 %v4585_v56, 0.0 }
 0x3c2   : > { %3392 = vst [vmem:[%s4619_s1 + $0x48] sm:$0xff] %v3322_v30   ;;  %v3332_v41 = vpack.c.bf16 %v2243_v31, %v2242_v25  ;;  %v3337_v44 = vpack.c.bf16 %v2245_v37, %v2244_v32  ;;  %v2249_v47 = vmax.f32 %v4591_v5, 0.0  ;;  %v2250_v48 = vmax.f32 %v4597_v17, 0.0 }
 0x3c3   : > { %3393 = vst [vmem:[%s4619_s1 + $0x50] sm:$0xff] %v3327_v38   ;;  %v3342_v49 = vpack.c.bf16 %v2247_v4, %v2246_v39  ;;  %v2251_v52 = vmax.f32 %v4603_v29, 0.0 }
 0x3c4   : > { %3394 = vst [vmem:[%s4619_s1 + $0x58] sm:$0xff] %v3332_v41   ;;  %3395 = vst [vmem:[%s4619_s1 + $0x60] sm:$0xff] %v3337_v44   ;;  %v3347_v53 = vpack.c.bf16 %v2249_v47, %v2248_v40 }
 0x3c5   : > { %3396 = vst [vmem:[%s4619_s1 + $0x68] sm:$0xff] %v3342_v49   ;;  %v3352_v54 = vpack.c.bf16 %v2251_v52, %v2250_v48 }
 0x3c6   : > { %3397 = vst [vmem:[%s4619_s1 + $0x70] sm:$0xff] %v3347_v53  }
 0x3c7   : > { %3398 = vst [vmem:[%s4619_s1 + $0x78] sm:$0xff] %v3352_v54  }
 0x3c8 PF: > { %p2990_p3 = scmp.ne.s32.totalorder %s4204_s27, 2 }
 0x3ca   : > { %2419 = sbr.rel (%p2990_p3) target bundleno = 1209 (0x4b9), region = 100 }
 0x3cf   : > { %v2437_v57 = vpack.c.bf16 %v4603_v29, %v4597_v17  ;;  %v2429_v60 = vpack.c.bf16 %v4600_v28, %v4594_v16  ;;  %v2436_v61 = vpack.c.bf16 %v4591_v5, %v4585_v56  ;;  %v2421_v62 = vld [vmem:[#allocation12] sm:$0xff]  ;;  %v2428_v63 = vpack.c.bf16 %v4588_v1, %v4582_v55 }
 0x3d0   : > { %v2435_v0 = vpack.c.bf16 %v4579_v46, %v4573_v36  ;;  %v2992_v6 = vcombine.high %v2421_v62, %v2421_v62  ;;  %v2427_v17 = vpack.c.bf16 %v4576_v45, %v4570_v33  ;;  %v2434_v56 = vpack.c.bf16 %v4567_v24, %v4561_v14 }
 0x3d1   : > { %3559 = vmatprep.subr.bf16.mxu0 %v2437_v57  ;;  %v2426_v5 = vpack.c.bf16 %v4564_v23, %v4558_v13  ;;  %v2433_v55 = vpack.c.bf16 %v4555_v3, %v4549_v59  ;;  %v2425_v36 = vpack.c.bf16 %v4552_v2, %v4546_v58  ;;  %v2432_v33 = vpack.c.bf16 %v4543_v51, %v4537_v43 }
 0x3d2   : > { %3560 = vmatpush3.bf16.msra.mxu0 %v2429_v60  ;;  %2477 = vmatprep.mubr.bf16.mxu0 %v2992_v6  ;;  %v2424_v14 = vpack.c.bf16 %v4540_v50, %v4534_v42  ;;  %v2431_v13 = vpack.c.bf16 %v4531_v35, %v4525_v27  ;;  %v2423_v59 = vpack.c.bf16 %v4528_v34, %v4522_v26  ;;  %v2420_v50 = vld [vmem:[#allocation5] sm:$0xff] }
 0x3d3   : > { %3561 = vmatprep.subr.bf16.mxu0 %v2436_v61  ;;  %v2430_v58 = vpack.c.bf16 %v4519_v19, %v4513_v11  ;;  %v2422_v43 = vpack.c.bf16 %v4516_v18, %v4510_v10  ;;  %v2991_v51 = vcombine.low %v2421_v62, %v2421_v62 }
 0x3d6   : > { %3562 = vmatpush3.bf16.msra.mxu0 %v2428_v63 }
 0x3d7   : > { %3563 = vmatprep.subr.bf16.mxu0 %v2435_v0 }
 0x3da   : > { %3564 = vmatpush3.bf16.msra.mxu0 %v2427_v17 }
 0x3db   : > { %3565 = vmatprep.subr.bf16.mxu0 %v2434_v56 }
 0x3de   : > { %3566 = vmatpush3.bf16.msra.mxu0 %v2426_v5 }
 0x3df   : > { %3567 = vmatprep.subr.bf16.mxu0 %v2433_v55 }
 0x3e2   : > { %3568 = vmatpush3.bf16.msra.mxu0 %v2425_v36 }
 0x3e3   : > { %3569 = vmatprep.subr.bf16.mxu0 %v2432_v33 }
 0x3e6   : > { %3570 = vmatpush3.bf16.msra.mxu0 %v2424_v14 }
 0x3e7   : > { %3571 = vmatprep.subr.bf16.mxu0 %v2431_v13 }
 0x3ea   : > { %3572 = vmatpush3.bf16.msra.mxu0 %v2423_v59 }
 0x3eb   : > { %3573 = vmatprep.subr.bf16.mxu0 %v2430_v58 }
 0x3ee   : > { %3574 = vmatpush3.bf16.msra.mxu0 %v2422_v43 }
 0x3f1   : > { %2478 = vmatmul.mubr.bf16.vlgmr.msra.gmra.mxu0 %v2991_v51 }
 0x4b1   : > { %v3575_v42 = vpop.f32.mrf.mxu0 }
 0x4b3   : > { %v3576_v2 = vpop.f32.mrf.mxu0 }
 0x4b4   : > { %v3577_v27 = vadd.f32 %v3576_v2, %v3575_v42 }
 0x4b5   : > { %v3578_v35 = vpop.f32.mrf.mxu0 }
 0x4b6   : > { %v2485_v3 = vadd.f32 %v3577_v27, %v2420_v50 }
 0x4b7   : > { %v3579_v23 = vpop.f32.mrf.mxu0 }
 0x4b8   : > { %2486 = vst [vmem:[#allocation5] sm:$0xff] %v2485_v3 }
 0x4b9 PF: > { %p2487_p10 = scmp.eq.s32.totalorder %s4204_s27, 2 }
 0x4ba   : > { %v3978_v11 = vld [vmem:[#allocation14 + $0x38] sm:$0xff] (%p2487_p10)   ;;  %v4224_v19 = vmov (%p2487_p10), 0.0   ;;  %v3979_v10 = vld [vmem:[#allocation14 + $0x30] sm:$0xff] (%p2487_p10)   ;;  %vm4225_vm0 = vmmov (%p2487_p10), 0   ;;  %v3980_v18 = vld [vmem:[#allocation14 + $0x28] sm:$0xff] (%p2487_p10)   ;;  %s4762_s23 = sld [smem:[#allocation24_spill]] (%p2487_p10) }
 0x4bb   : > { %2493 = sbr.rel (!%p2487_p10) target bundleno = 1442 (0x5a2), region = 104  ;;  %3686 = vmatprep.subr.bf16.mxu0 (%p2487_p10), %v4224_v19  ;;  %3702 = vmatprep.mubr.msk.bf16.mxu0 (%p2487_p10), %vm4225_vm0, %v4224_v19  ;;  %v3981_v26 = vld [vmem:[#allocation14 + $0x20] sm:$0xff] (%p2487_p10)   ;;  %v3982_v34 = vld [vmem:[#allocation14 + $0x18] sm:$0xff] (%p2487_p10)   ;;  %v3983_v24 = vld [vmem:[#allocation14 + $0x10] sm:$0xff] (%p2487_p10)  }
 0x4bc   : > { %3687 = vmatpush3.bf16.msra.mxu0 (%p2487_p10), %v3978_v11  ;;  %v3984_v45 = vld [vmem:[#allocation14 + $0x8] sm:$0xff] (%p2487_p10)   ;;  %v3985_v46 = vld [vmem:[#allocation14] sm:$0xff] (%p2487_p10)  }
 0x4bd   : > { %3688 = vmatprep.subr.bf16.mxu0 (%p2487_p10), %v4224_v19 }
 0x4bf   : > { %v2494_v1 = vld [vmem:[#allocation5] sm:$0xff] (%p2487_p10) }
 0x4c0   : > { %3689 = vmatpush3.bf16.msra.mxu0 %v3979_v10  ;;  %v2495_v16 = vpack.c.bf16 %v2494_v1, %v2494_v1  ;;  %v2995_v28 = vld [vmem:[%s4762_s23] ss:$0 sm:$0xff] }
 0x4c1   : > { %3690 = vmatprep.subr.bf16.mxu0 %v4224_v19 }
 0x4c4   : > { %3691 = vmatpush3.bf16.msra.mxu0 %v3980_v18 }
 0x4c5   : > { %3692 = vmatprep.subr.bf16.mxu0 %v4224_v19 }
 0x4c8   : > { %3693 = vmatpush3.bf16.msra.mxu0 %v3981_v26 }
 0x4c9   : > { %3694 = vmatprep.subr.bf16.mxu0 %v4224_v19 }
 0x4cc   : > { %3695 = vmatpush3.bf16.msra.mxu0 %v3982_v34 }
 0x4cd   : > { %3696 = vmatprep.subr.bf16.mxu0 %v4224_v19 }
 0x4d0   : > { %3697 = vmatpush3.bf16.msra.mxu0 %v3983_v24 }
 0x4d1   : > { %3698 = vmatprep.subr.bf16.mxu0 %v4224_v19 }
 0x4d4   : > { %3699 = vmatpush3.bf16.msra.mxu0 %v3984_v45 }
 0x4d5   : > { %3700 = vmatprep.subr.bf16.mxu0 %v4224_v19 }
 0x4d8   : > { %3701 = vmatpush3.bf16.msra.mxu0 %v3985_v46 }
 0x4db   : > { %3703 = vmatmul.mubr.bf16.vlgmr.msra.gmra.mxu0 %v2495_v16 }
 0x59b   : > { %v2601_v29 = vpop.f32.mrf.mxu0 }
 0x59c   : > { %v2602_v7 = vadd.f32 %v2995_v28, %v2601_v29 }
 0x59d   : > { %v3704_v8 = vpop.f32.mrf.mxu0 }
 0x59e   : > { %2607 = vst [vmem:[#allocation15] sm:$0xff] %v2602_v7 }
 0x59f   : > { %v2604_v9 = vpop.f32.mrf.mxu0 }
 0x5a1   : > { %v3705_v12 = vpop.f32.mrf.mxu0 }
 0x5a2 PF: > { %p3802_p12 = scmp.eq.s32.totalorder %s4296_s30, 2  ;;  %s4226_s14 = smov [#allocation15]  }
 0x5a3   : > { %s2615_s19 = sshll.u32 %s4226_s14, 4  ;;  %s2616_s19 = int_to_ptr.vmem [resolvable:$true] %s2615_s19 }
 0x5a4   : > { %s4118_s9 = scalar_lea.vmem %s2616_s19, 128  ;;  %p4125_p11 = scmp.lt.s32.totalorder %s2616_s19, %s2616_s19 }
 0x5a5   : > { %p4119_p6 = scmp.ne.s32.totalorder %s2616_s19, %s4118_s9  ;;  %p4126_p5 = scmp.lt.s32.totalorder %s4118_s9, %s4118_s9 }
 0x5a7   : > { %p4120_p13 = pnand %p4119_p6, %p3802_p12  ;;  %p4127_p9 = por %p4126_p5, %p4125_p11 }
 0x5a9   : > { %p4121_p8 = pneg %p4120_p13 }
 0x5ab   : > { %p4128_p4 = pnand %p4127_p9, %p4121_p8 }
 0x5ad   : > { %4131 = shalt.err (!%p4128_p4)
}
 0x5ae   : > { %s4763_s8 = sld [smem:[#allocation25_spill]] }
 0x5b4   : > { %3773 = dma.vmem_to_hbm [thread:$0]  (%p3802_p12), %s2616_s19, 128, %s4763_s8, [#allocation8]  }
 0x5b5   : > { %4187 = dma.done.wait (%p3802_p12), [#allocation8], 128  }
 0x5b6   : > { %4189 = vsyncadd (%p3802_p12), [#allocation8], 4294967168 }
 0x5b7 PF: > { %s25_s29 = sadd.s32 1, %s4212_s29   ;;  %s4764_s24 = smov %s4196_s25 }
 0x5b8   : > { %p22_p7 = scmp.ge.s32.totalorder %s25_s29, 5   ;;  %s4765_s25 = smov %s4200_s26 }
 0x5b9   : > { %s4766_s26 = smov %s4411_s15  ;;  %s4767_s27 = smov %s4208_s28 }
 0x5ba   : > { %s4768_s28 = smov %s4770_s20  ;;  %24 = sbr.rel (!%p22_p7) target bundleno = 13 (0xd), region = 163 }
 0x5bf   :  { %2628 = vsyncpa [#allocation7], 1 }
 0x5c0   :  { %2630 = vsyncpa [#allocation7 + $0x1], 1 }
 0x5c1   :  { %2631 = vsyncpa [#allocation10], 1 }
 0x5c2   :  { %2633 = vsyncpa [#allocation10 + $0x1], 1 }
 0x5c3   :  { %2634 = vsyncpa [#allocation13], 1 }
 0x5c4   :  { %2636 = vsyncpa [#allocation13 + $0x1], 1 }
 0x5c5   :  { %2637 = vsyncpa [#allocation8], 1 }
 0x5c6   :  { %2639 = vsyncpa [#allocation8 + $0x1], 1 }

</bundles_post_ra>
